<compile_context>
chip_gen: v7x
topology: tpu7x:2x2x1
jax: 0.10.0
libtpu: 0.0.40
codegen_flags: <defaults>
</compile_context>

<pallas_src>
import math

import jax
import jax.numpy as jnp
from jax.experimental import pallas as pl
from jax.experimental.pallas import tpu as pltpu

EPS = 1e-5


def double_conv(x_nchw, w1_hwio, b1, g1, be1, w2_hwio, b2, g2, be2):
    """x_nchw: (N, Cin, H, W); conv weights in HWIO: (3, 3, Cin/Cout, Cout)."""
    N, Cin, H, W = x_nchw.shape
    Cout = w1_hwio.shape[-1]
    R = N * H
    f32 = jnp.float32

    # The log2(W) lane-roll reduction in the BN epilogue needs W power-of-two.
    # TODO(synk): general W -> use a block-sum fold matrix instead of rolls.
    assert W & (W - 1) == 0, "W must be a power of two for the lane reduction"

    # Pad Cin so the input lane axis W*Cin_p is a multiple of 128 when cheap
    # (demo: Cin 4 -> 8, lane width exactly 128 -> unmasked vld/vst).
    cmult = 128 // math.gcd(W, 128)
    Cin_p = (-(-Cin // cmult) * cmult) if cmult <= max(8, 2 * Cin) else Cin
    L1 = W * Cin_p          # input lane width
    L2 = W * Cout           # activation / output lane width (128 at demo shape)

    # ---- wrapper-side layout prep: 1x input traffic, no HBM im2col ----
    x_nhwc = jnp.transpose(x_nchw, (0, 2, 3, 1)).astype(f32)          # (N,H,W,Cin)
    x_pad = jnp.pad(x_nhwc, ((0, 0), (1, 1), (0, 0), (0, Cin_p - Cin)))
    x_ld = x_pad.reshape(N, H + 2, L1)                                # lane-dense rows

    # Per-kh band weights: fold the kw shift + channel mix into one matrix.
    #   A[kh][(wi*Ci+ci), (wo*Cout+co)] = sum_kw [wi == wo + kw - 1] * w[kh,kw,ci,co]
    def band_weights(w_p, ci):
        mats = []
        for kh in range(3):
            a = jnp.zeros((W * ci, W * Cout), f32)
            for kw in range(3):
                shift = jnp.eye(W, k=-(kw - 1), dtype=f32)  # out[wo] <- in[wo+kw-1]
                a = a + jnp.kron(shift, w_p[kh, kw])
            mats.append(a)
        return jnp.stack(mats, axis=0)                       # (3, W*ci, W*Cout)

    w1_p = jnp.pad(w1_hwio.astype(f32), ((0, 0), (0, 0), (0, Cin_p - Cin), (0, 0)))
    a1 = band_weights(w1_p, Cin_p)                            # (3, L1, L2)
    a2 = band_weights(w2_hwio.astype(f32), Cout)              # (3, L2, L2)

    # Per-channel vectors tiled across the W lane blocks: lane l -> v[l % Cout].
    tile_c = lambda v: jnp.tile(v.astype(f32).reshape(1, Cout), (1, W))   # (1, L2)

    # ---------------- kernel helpers (close over static dims) ----------------
    def lane_allsum(s):
        # (1, L2) per-block row-sums -> per-channel totals replicated in every
        # lane block, via a log2(W) tree of cyclic lane rolls (XLU slot).
        step = Cout
        while step < L2:
            s = s + pltpu.roll(s, step, axis=1)
            step *= 2
        return s

    def conv3x3(src_ref, a_ref, bias_t):
        # src_ref: (N, H+2, L_in) H-halo padded, lane-dense.
        # Returns per-batch (H, L_out) f32 accumulators (bias added):
        # 3 shift-accumulate MXU matmuls, kh realized as a sublane row offset.
        accs = []
        for n in range(N):                       # static unroll
            a = jnp.dot(src_ref[n, 0:H, :], a_ref[0],
                        preferred_element_type=jnp.float32)
            for kh in (1, 2):
                a = a + jnp.dot(src_ref[n, kh:kh + H, :], a_ref[kh],
                                preferred_element_type=jnp.float32)
            accs.append(a + bias_t)
        return accs

    def bn_relu(accs, gamma_t, beta_t):
        # Training-mode BatchNorm2d over ALL N*H*W positions (biased variance),
        # two-pass (centered) for numerical robustness, fused scale/shift+ReLU.
        inv_m = 1.0 / float(N * H * W)
        s1 = jnp.zeros((1, L2), jnp.float32)
        for a in accs:
            s1 = s1 + jnp.sum(a, axis=0, keepdims=True)       # sublane reduce
        mean = lane_allsum(s1) * inv_m                         # per-channel mean
        s2 = jnp.zeros((1, L2), jnp.float32)
        for a in accs:
            d = a - mean
            s2 = s2 + jnp.sum(d * d, axis=0, keepdims=True)
        var = lane_allsum(s2) * inv_m                          # biased variance
        scale = gamma_t * jax.lax.rsqrt(var + EPS)
        shift = beta_t - mean * scale
        return [jnp.maximum(a * scale + shift, 0.0) for a in accs]

    def kernel(x_ref, a1_ref, b1_ref, g1_ref, be1_ref,
               a2_ref, b2_ref, g2_ref, be2_ref,
               out_ref, y1pad_ref):
        # ---- conv1 + fused BN/ReLU (all lane-dense) ----
        y1 = bn_relu(conv3x3(x_ref, a1_ref, b1_ref[...]), g1_ref[...], be1_ref[...])

        # ---- H-halo, lane-dense intermediate (full-lane-width zero stores) ----
        zrow = jnp.zeros((1, L2), jnp.float32)
        for n in range(N):
            y1pad_ref[n, 0:1, :] = zrow
            y1pad_ref[n, H + 1:H + 2, :] = zrow
            y1pad_ref[n, 1:H + 1, :] = y1[n]

        # ---- conv2 (no im2col scratch) + fused BN/ReLU ----
        y2 = bn_relu(conv3x3(y1pad_ref, a2_ref, b2_ref[...]), g2_ref[...], be2_ref[...])

        # lane-dense output store: W*Cout = 128 here -> unmasked 128-lane vst
        for n in range(N):
            out_ref[n * H:(n + 1) * H, :] = y2[n]

    vmem = pl.BlockSpec(memory_space=pltpu.MemorySpace.VMEM)
    out2d = pl.pallas_call(
        kernel,
        out_shape=jax.ShapeDtypeStruct((R, L2), f32),
        in_specs=[vmem] * 9,
        out_specs=vmem,
        scratch_shapes=[pltpu.VMEM((N, H + 2, L2), f32)],     # H-halo padded y1
    )(x_ld, a1, tile_c(b1), tile_c(g1), tile_c(be1),
      a2, tile_c(b2), tile_c(g2), tile_c(be2))

    # un-fold the lane-dense layout back to NCHW
    return jnp.transpose(out2d.reshape(N, H, W, Cout), (0, 3, 1, 2))


def reference(x_nchw, w1_hwio, b1, g1, be1, w2_hwio, b2, g2, be2):
    """Pure-JAX reference matching PyTorch DoubleConv (training-mode BN)."""
    def conv(x, w, b):
        y = jax.lax.conv_general_dilated(
            x, w, window_strides=(1, 1), padding="SAME",
            dimension_numbers=("NCHW", "HWIO", "NCHW"))
        return y + b[None, :, None, None]

    def bn_relu(y, g, be):
        mean = y.mean(axis=(0, 2, 3), keepdims=True)
        var = ((y - mean) ** 2).mean(axis=(0, 2, 3), keepdims=True)
        yh = (y - mean) / jnp.sqrt(var + EPS)
        return jnp.maximum(yh * g[None, :, None, None] + be[None, :, None, None], 0.0)

    y = bn_relu(conv(x_nchw, w1_hwio, b1), g1, be1)
    return bn_relu(conv(y, w2_hwio, b2), g2, be2)


if __name__ == "__main__":
    N, Cin, Cout, H, W = 2, 4, 8, 16, 16   # W * Cout = 128 -> lane-dense activations

    key = jax.random.PRNGKey(0)
    ks = jax.random.split(key, 9)
    x = jax.random.normal(ks[0], (N, Cin, H, W), jnp.float32)

    # Synthetic parameters (conv weights in HWIO, BN per-channel vectors).
    w1 = jax.random.normal(ks[1], (3, 3, Cin, Cout), jnp.float32) * 0.2
    b1 = jax.random.normal(ks[2], (Cout,), jnp.float32) * 0.1
    g1 = 1.0 + 0.1 * jax.random.normal(ks[3], (Cout,), jnp.float32)
    be1 = 0.1 * jax.random.normal(ks[4], (Cout,), jnp.float32)
    w2 = jax.random.normal(ks[5], (3, 3, Cout, Cout), jnp.float32) * 0.2
    b2 = jax.random.normal(ks[6], (Cout,), jnp.float32) * 0.1
    g2 = 1.0 + 0.1 * jax.random.normal(ks[7], (Cout,), jnp.float32)
    be2 = 0.1 * jax.random.normal(ks[8], (Cout,), jnp.float32)

    out = jax.jit(double_conv)(x, w1, b1, g1, be1, w2, b2, g2, be2)
    out = jax.block_until_ready(out)

    ref = reference(x, w1, b1, g1, be1, w2, b2, g2, be2)
    assert out.shape == (N, Cout, H, W)
    err = float(jnp.max(jnp.abs(out - ref)))
    assert jnp.allclose(out, ref, atol=1e-4, rtol=1e-4), err

    print("KERNEL_OK")
</pallas_src>

<mosaic_0001>
module attributes {stable_mosaic.version = 11 : i64} {
  func.func @kernel(%arg0: memref<2x18x128xf32, #tpu.memory_space<vmem>>, %arg1: memref<3x128x128xf32, #tpu.memory_space<vmem>>, %arg2: memref<1x128xf32, #tpu.memory_space<vmem>>, %arg3: memref<1x128xf32, #tpu.memory_space<vmem>>, %arg4: memref<1x128xf32, #tpu.memory_space<vmem>>, %arg5: memref<3x128x128xf32, #tpu.memory_space<vmem>>, %arg6: memref<1x128xf32, #tpu.memory_space<vmem>>, %arg7: memref<1x128xf32, #tpu.memory_space<vmem>>, %arg8: memref<1x128xf32, #tpu.memory_space<vmem>>, %arg9: memref<32x128xf32, #tpu.memory_space<vmem>>, %arg10: memref<2x18x128xf32, #tpu.memory_space<vmem>>) attributes {dimension_semantics = [], scalar_prefetch = 0 : i64, scratch_operands = 1 : i64, tpu.core_type = #tpu.core_type<tc>} {
    %c0 = arith.constant 0 : index
    %c0_0 = arith.constant 0 : index
    %0 = vector.load %arg2[%c0, %c0_0] : memref<1x128xf32, #tpu.memory_space<vmem>>, vector<1x128xf32>
    %c0_1 = arith.constant 0 : index
    %c0_2 = arith.constant 0 : index
    %c0_3 = arith.constant 0 : index
    %1 = vector.load %arg0[%c0_1, %c0_2, %c0_3] : memref<2x18x128xf32, #tpu.memory_space<vmem>>, vector<1x16x128xf32>
    %2 = vector.shape_cast %1 : vector<1x16x128xf32> to vector<16x128xf32>
    %c0_4 = arith.constant 0 : index
    %c0_5 = arith.constant 0 : index
    %c0_6 = arith.constant 0 : index
    %3 = vector.load %arg1[%c0_4, %c0_5, %c0_6] : memref<3x128x128xf32, #tpu.memory_space<vmem>>, vector<1x128x128xf32>
    %4 = vector.shape_cast %3 : vector<1x128x128xf32> to vector<128x128xf32>
    %cst = arith.constant dense<0.000000e+00> : vector<16x128xf32>
    %5 = tpu.matmul %2, %4, %cst {dimension_numbers = #tpu.dot_dimension_numbers<[1], [0], [0], [1], [0, 0, 1, 1], [], []>} : vector<16x128xf32>, vector<128x128xf32>, vector<16x128xf32> -> vector<16x128xf32>
    %c0_7 = arith.constant 0 : index
    %c1 = arith.constant 1 : index
    %c0_8 = arith.constant 0 : index
    %6 = vector.load %arg0[%c0_7, %c1, %c0_8] : memref<2x18x128xf32, #tpu.memory_space<vmem>>, vector<1x16x128xf32>
    %7 = vector.shape_cast %6 : vector<1x16x128xf32> to vector<16x128xf32>
    %c1_9 = arith.constant 1 : index
    %c0_10 = arith.constant 0 : index
    %c0_11 = arith.constant 0 : index
    %8 = vector.load %arg1[%c1_9, %c0_10, %c0_11] : memref<3x128x128xf32, #tpu.memory_space<vmem>>, vector<1x128x128xf32>
    %9 = vector.shape_cast %8 : vector<1x128x128xf32> to vector<128x128xf32>
    %cst_12 = arith.constant dense<0.000000e+00> : vector<16x128xf32>
    %10 = tpu.matmul %7, %9, %cst_12 {dimension_numbers = #tpu.dot_dimension_numbers<[1], [0], [0], [1], [0, 0, 1, 1], [], []>} : vector<16x128xf32>, vector<128x128xf32>, vector<16x128xf32> -> vector<16x128xf32>
    %11 = arith.addf %5, %10 : vector<16x128xf32>
    %c0_13 = arith.constant 0 : index
    %c2 = arith.constant 2 : index
    %c0_14 = arith.constant 0 : index
    %12 = vector.load %arg0[%c0_13, %c2, %c0_14] : memref<2x18x128xf32, #tpu.memory_space<vmem>>, vector<1x16x128xf32>
    %13 = vector.shape_cast %12 : vector<1x16x128xf32> to vector<16x128xf32>
    %c2_15 = arith.constant 2 : index
    %c0_16 = arith.constant 0 : index
    %c0_17 = arith.constant 0 : index
    %14 = vector.load %arg1[%c2_15, %c0_16, %c0_17] : memref<3x128x128xf32, #tpu.memory_space<vmem>>, vector<1x128x128xf32>
    %15 = vector.shape_cast %14 : vector<1x128x128xf32> to vector<128x128xf32>
    %cst_18 = arith.constant dense<0.000000e+00> : vector<16x128xf32>
    %16 = tpu.matmul %13, %15, %cst_18 {dimension_numbers = #tpu.dot_dimension_numbers<[1], [0], [0], [1], [0, 0, 1, 1], [], []>} : vector<16x128xf32>, vector<128x128xf32>, vector<16x128xf32> -> vector<16x128xf32>
    %17 = arith.addf %11, %16 : vector<16x128xf32>
    %18 = vector.broadcast %0 : vector<1x128xf32> to vector<16x128xf32>
    %19 = arith.addf %17, %18 : vector<16x128xf32>
    %c1_19 = arith.constant 1 : index
    %c0_20 = arith.constant 0 : index
    %c0_21 = arith.constant 0 : index
    %20 = vector.load %arg0[%c1_19, %c0_20, %c0_21] : memref<2x18x128xf32, #tpu.memory_space<vmem>>, vector<1x16x128xf32>
    %21 = vector.shape_cast %20 : vector<1x16x128xf32> to vector<16x128xf32>
    %c0_22 = arith.constant 0 : index
    %c0_23 = arith.constant 0 : index
    %c0_24 = arith.constant 0 : index
    %22 = vector.load %arg1[%c0_22, %c0_23, %c0_24] : memref<3x128x128xf32, #tpu.memory_space<vmem>>, vector<1x128x128xf32>
    %23 = vector.shape_cast %22 : vector<1x128x128xf32> to vector<128x128xf32>
    %cst_25 = arith.constant dense<0.000000e+00> : vector<16x128xf32>
    %24 = tpu.matmul %21, %23, %cst_25 {dimension_numbers = #tpu.dot_dimension_numbers<[1], [0], [0], [1], [0, 0, 1, 1], [], []>} : vector<16x128xf32>, vector<128x128xf32>, vector<16x128xf32> -> vector<16x128xf32>
    %c1_26 = arith.constant 1 : index
    %c1_27 = arith.constant 1 : index
    %c0_28 = arith.constant 0 : index
    %25 = vector.load %arg0[%c1_26, %c1_27, %c0_28] : memref<2x18x128xf32, #tpu.memory_space<vmem>>, vector<1x16x128xf32>
    %26 = vector.shape_cast %25 : vector<1x16x128xf32> to vector<16x128xf32>
    %c1_29 = arith.constant 1 : index
    %c0_30 = arith.constant 0 : index
    %c0_31 = arith.constant 0 : index
    %27 = vector.load %arg1[%c1_29, %c0_30, %c0_31] : memref<3x128x128xf32, #tpu.memory_space<vmem>>, vector<1x128x128xf32>
    %28 = vector.shape_cast %27 : vector<1x128x128xf32> to vector<128x128xf32>
    %cst_32 = arith.constant dense<0.000000e+00> : vector<16x128xf32>
    %29 = tpu.matmul %26, %28, %cst_32 {dimension_numbers = #tpu.dot_dimension_numbers<[1], [0], [0], [1], [0, 0, 1, 1], [], []>} : vector<16x128xf32>, vector<128x128xf32>, vector<16x128xf32> -> vector<16x128xf32>
    %30 = arith.addf %24, %29 : vector<16x128xf32>
    %c1_33 = arith.constant 1 : index
    %c2_34 = arith.constant 2 : index
    %c0_35 = arith.constant 0 : index
    %31 = vector.load %arg0[%c1_33, %c2_34, %c0_35] : memref<2x18x128xf32, #tpu.memory_space<vmem>>, vector<1x16x128xf32>
    %32 = vector.shape_cast %31 : vector<1x16x128xf32> to vector<16x128xf32>
    %c2_36 = arith.constant 2 : index
    %c0_37 = arith.constant 0 : index
    %c0_38 = arith.constant 0 : index
    %33 = vector.load %arg1[%c2_36, %c0_37, %c0_38] : memref<3x128x128xf32, #tpu.memory_space<vmem>>, vector<1x128x128xf32>
    %34 = vector.shape_cast %33 : vector<1x128x128xf32> to vector<128x128xf32>
    %cst_39 = arith.constant dense<0.000000e+00> : vector<16x128xf32>
    %35 = tpu.matmul %32, %34, %cst_39 {dimension_numbers = #tpu.dot_dimension_numbers<[1], [0], [0], [1], [0, 0, 1, 1], [], []>} : vector<16x128xf32>, vector<128x128xf32>, vector<16x128xf32> -> vector<16x128xf32>
    %36 = arith.addf %30, %35 : vector<16x128xf32>
    %37 = vector.broadcast %0 : vector<1x128xf32> to vector<16x128xf32>
    %38 = arith.addf %36, %37 : vector<16x128xf32>
    %c0_40 = arith.constant 0 : index
    %c0_41 = arith.constant 0 : index
    %39 = vector.load %arg3[%c0_40, %c0_41] : memref<1x128xf32, #tpu.memory_space<vmem>>, vector<1x128xf32>
    %c0_42 = arith.constant 0 : index
    %c0_43 = arith.constant 0 : index
    %40 = vector.load %arg4[%c0_42, %c0_43] : memref<1x128xf32, #tpu.memory_space<vmem>>, vector<1x128xf32>
    %cst_44 = arith.constant 0.000000e+00 : f32
    %41 = vector.broadcast %cst_44 : f32 to vector<1x128xf32>
    %cst_45 = arith.constant dense<0.000000e+00> : vector<128xf32>
    %42 = vector.multi_reduction <add>, %19, %cst_45 [0] : vector<16x128xf32> to vector<128xf32>
    %43 = vector.shape_cast %42 : vector<128xf32> to vector<1x128xf32>
    %44 = arith.addf %41, %43 : vector<1x128xf32>
    %cst_46 = arith.constant dense<0.000000e+00> : vector<128xf32>
    %45 = vector.multi_reduction <add>, %38, %cst_46 [0] : vector<16x128xf32> to vector<128xf32>
    %46 = vector.shape_cast %45 : vector<128xf32> to vector<1x128xf32>
    %47 = arith.addf %44, %46 : vector<1x128xf32>
    %c8_i32 = arith.constant 8 : i32
    %48 = tpu.dynamic_rotate %47 by %c8_i32 dim 1 : vector<1x128xf32>, i32 -> vector<1x128xf32>
    %49 = arith.addf %47, %48 : vector<1x128xf32>
    %c16_i32 = arith.constant 16 : i32
    %50 = tpu.dynamic_rotate %49 by %c16_i32 dim 1 : vector<1x128xf32>, i32 -> vector<1x128xf32>
    %51 = arith.addf %49, %50 : vector<1x128xf32>
    %c32_i32 = arith.constant 32 : i32
    %52 = tpu.dynamic_rotate %51 by %c32_i32 dim 1 : vector<1x128xf32>, i32 -> vector<1x128xf32>
    %53 = arith.addf %51, %52 : vector<1x128xf32>
    %c64_i32 = arith.constant 64 : i32
    %54 = tpu.dynamic_rotate %53 by %c64_i32 dim 1 : vector<1x128xf32>, i32 -> vector<1x128xf32>
    %55 = arith.addf %53, %54 : vector<1x128xf32>
    %cst_47 = arith.constant 0.001953125 : f32
    %56 = vector.broadcast %cst_47 : f32 to vector<1x128xf32>
    %57 = arith.mulf %55, %56 : vector<1x128xf32>
    %cst_48 = arith.constant 0.000000e+00 : f32
    %58 = vector.broadcast %cst_48 : f32 to vector<1x128xf32>
    %59 = vector.broadcast %57 : vector<1x128xf32> to vector<16x128xf32>
    %60 = arith.subf %19, %59 : vector<16x128xf32>
    %61 = arith.mulf %60, %60 : vector<16x128xf32>
    %cst_49 = arith.constant dense<0.000000e+00> : vector<128xf32>
    %62 = vector.multi_reduction <add>, %61, %cst_49 [0] : vector<16x128xf32> to vector<128xf32>
    %63 = vector.shape_cast %62 : vector<128xf32> to vector<1x128xf32>
    %64 = arith.addf %58, %63 : vector<1x128xf32>
    %65 = vector.broadcast %57 : vector<1x128xf32> to vector<16x128xf32>
    %66 = arith.subf %38, %65 : vector<16x128xf32>
    %67 = arith.mulf %66, %66 : vector<16x128xf32>
    %cst_50 = arith.constant dense<0.000000e+00> : vector<128xf32>
    %68 = vector.multi_reduction <add>, %67, %cst_50 [0] : vector<16x128xf32> to vector<128xf32>
    %69 = vector.shape_cast %68 : vector<128xf32> to vector<1x128xf32>
    %70 = arith.addf %64, %69 : vector<1x128xf32>
    %c8_i32_51 = arith.constant 8 : i32
    %71 = tpu.dynamic_rotate %70 by %c8_i32_51 dim 1 : vector<1x128xf32>, i32 -> vector<1x128xf32>
    %72 = arith.addf %70, %71 : vector<1x128xf32>
    %c16_i32_52 = arith.constant 16 : i32
    %73 = tpu.dynamic_rotate %72 by %c16_i32_52 dim 1 : vector<1x128xf32>, i32 -> vector<1x128xf32>
    %74 = arith.addf %72, %73 : vector<1x128xf32>
    %c32_i32_53 = arith.constant 32 : i32
    %75 = tpu.dynamic_rotate %74 by %c32_i32_53 dim 1 : vector<1x128xf32>, i32 -> vector<1x128xf32>
    %76 = arith.addf %74, %75 : vector<1x128xf32>
    %c64_i32_54 = arith.constant 64 : i32
    %77 = tpu.dynamic_rotate %76 by %c64_i32_54 dim 1 : vector<1x128xf32>, i32 -> vector<1x128xf32>
    %78 = arith.addf %76, %77 : vector<1x128xf32>
    %cst_55 = arith.constant 0.001953125 : f32
    %79 = vector.broadcast %cst_55 : f32 to vector<1x128xf32>
    %80 = arith.mulf %78, %79 : vector<1x128xf32>
    %cst_56 = arith.constant 9.99999974E-6 : f32
    %81 = vector.broadcast %cst_56 : f32 to vector<1x128xf32>
    %82 = arith.addf %80, %81 : vector<1x128xf32>
    %83 = math.rsqrt %82 : vector<1x128xf32>
    %84 = arith.mulf %39, %83 : vector<1x128xf32>
    %85 = arith.mulf %57, %84 : vector<1x128xf32>
    %86 = arith.subf %40, %85 : vector<1x128xf32>
    %87 = vector.broadcast %84 : vector<1x128xf32> to vector<16x128xf32>
    %88 = arith.mulf %19, %87 : vector<16x128xf32>
    %89 = vector.broadcast %86 : vector<1x128xf32> to vector<16x128xf32>
    %90 = arith.addf %88, %89 : vector<16x128xf32>
    %cst_57 = arith.constant 0.000000e+00 : f32
    %91 = vector.broadcast %cst_57 : f32 to vector<16x128xf32>
    %92 = arith.maximumf %90, %91 : vector<16x128xf32>
    %93 = vector.broadcast %84 : vector<1x128xf32> to vector<16x128xf32>
    %94 = arith.mulf %38, %93 : vector<16x128xf32>
    %95 = vector.broadcast %86 : vector<1x128xf32> to vector<16x128xf32>
    %96 = arith.addf %94, %95 : vector<16x128xf32>
    %cst_58 = arith.constant 0.000000e+00 : f32
    %97 = vector.broadcast %cst_58 : f32 to vector<16x128xf32>
    %98 = arith.maximumf %96, %97 : vector<16x128xf32>
    %cst_59 = arith.constant 0.000000e+00 : f32
    %99 = vector.broadcast %cst_59 : f32 to vector<1x128xf32>
    %c0_60 = arith.constant 0 : index
    %c0_61 = arith.constant 0 : index
    %c0_62 = arith.constant 0 : index
    %100 = vector.load %arg10[%c0_60, %c0_61, %c0_62] : memref<2x18x128xf32, #tpu.memory_space<vmem>>, vector<1x1x128xf32>
    %101 = vector.shape_cast %100 : vector<1x1x128xf32> to vector<1x128xf32>
    %102 = vector.shape_cast %99 : vector<1x128xf32> to vector<1x1x128xf32>
    tpu.vector_store %arg10[%c0_60, %c0_61, %c0_62], %102 {strides = array<i32>} : memref<2x18x128xf32, #tpu.memory_space<vmem>>, vector<1x1x128xf32>,
    %c0_63 = arith.constant 0 : index
    %c17 = arith.constant 17 : index
    %c0_64 = arith.constant 0 : index
    %103 = vector.load %arg10[%c0_63, %c17, %c0_64] : memref<2x18x128xf32, #tpu.memory_space<vmem>>, vector<1x1x128xf32>
    %104 = vector.shape_cast %103 : vector<1x1x128xf32> to vector<1x128xf32>
    %105 = vector.shape_cast %99 : vector<1x128xf32> to vector<1x1x128xf32>
    tpu.vector_store %arg10[%c0_63, %c17, %c0_64], %105 {strides = array<i32>} : memref<2x18x128xf32, #tpu.memory_space<vmem>>, vector<1x1x128xf32>,
    %c0_65 = arith.constant 0 : index
    %c1_66 = arith.constant 1 : index
    %c0_67 = arith.constant 0 : index
    %106 = vector.load %arg10[%c0_65, %c1_66, %c0_67] : memref<2x18x128xf32, #tpu.memory_space<vmem>>, vector<1x16x128xf32>
    %107 = vector.shape_cast %106 : vector<1x16x128xf32> to vector<16x128xf32>
    %108 = vector.shape_cast %92 : vector<16x128xf32> to vector<1x16x128xf32>
    tpu.vector_store %arg10[%c0_65, %c1_66, %c0_67], %108 {strides = array<i32>} : memref<2x18x128xf32, #tpu.memory_space<vmem>>, vector<1x16x128xf32>,
    %c1_68 = arith.constant 1 : index
    %c0_69 = arith.constant 0 : index
    %c0_70 = arith.constant 0 : index
    %109 = vector.load %arg10[%c1_68, %c0_69, %c0_70] : memref<2x18x128xf32, #tpu.memory_space<vmem>>, vector<1x1x128xf32>
    %110 = vector.shape_cast %109 : vector<1x1x128xf32> to vector<1x128xf32>
    %111 = vector.shape_cast %99 : vector<1x128xf32> to vector<1x1x128xf32>
    tpu.vector_store %arg10[%c1_68, %c0_69, %c0_70], %111 {strides = array<i32>} : memref<2x18x128xf32, #tpu.memory_space<vmem>>, vector<1x1x128xf32>,
    %c1_71 = arith.constant 1 : index
    %c17_72 = arith.constant 17 : index
    %c0_73 = arith.constant 0 : index
    %112 = vector.load %arg10[%c1_71, %c17_72, %c0_73] : memref<2x18x128xf32, #tpu.memory_space<vmem>>, vector<1x1x128xf32>
    %113 = vector.shape_cast %112 : vector<1x1x128xf32> to vector<1x128xf32>
    %114 = vector.shape_cast %99 : vector<1x128xf32> to vector<1x1x128xf32>
    tpu.vector_store %arg10[%c1_71, %c17_72, %c0_73], %114 {strides = array<i32>} : memref<2x18x128xf32, #tpu.memory_space<vmem>>, vector<1x1x128xf32>,
    %c1_74 = arith.constant 1 : index
    %c1_75 = arith.constant 1 : index
    %c0_76 = arith.constant 0 : index
    %115 = vector.load %arg10[%c1_74, %c1_75, %c0_76] : memref<2x18x128xf32, #tpu.memory_space<vmem>>, vector<1x16x128xf32>
    %116 = vector.shape_cast %115 : vector<1x16x128xf32> to vector<16x128xf32>
    %117 = vector.shape_cast %98 : vector<16x128xf32> to vector<1x16x128xf32>
    tpu.vector_store %arg10[%c1_74, %c1_75, %c0_76], %117 {strides = array<i32>} : memref<2x18x128xf32, #tpu.memory_space<vmem>>, vector<1x16x128xf32>,
    %c0_77 = arith.constant 0 : index
    %c0_78 = arith.constant 0 : index
    %118 = vector.load %arg6[%c0_77, %c0_78] : memref<1x128xf32, #tpu.memory_space<vmem>>, vector<1x128xf32>
    %c0_79 = arith.constant 0 : index
    %c0_80 = arith.constant 0 : index
    %c0_81 = arith.constant 0 : index
    %119 = vector.load %arg10[%c0_79, %c0_80, %c0_81] : memref<2x18x128xf32, #tpu.memory_space<vmem>>, vector<1x16x128xf32>
    %120 = vector.shape_cast %119 : vector<1x16x128xf32> to vector<16x128xf32>
    %c0_82 = arith.constant 0 : index
    %c0_83 = arith.constant 0 : index
    %c0_84 = arith.constant 0 : index
    %121 = vector.load %arg5[%c0_82, %c0_83, %c0_84] : memref<3x128x128xf32, #tpu.memory_space<vmem>>, vector<1x128x128xf32>
    %122 = vector.shape_cast %121 : vector<1x128x128xf32> to vector<128x128xf32>
    %cst_85 = arith.constant dense<0.000000e+00> : vector<16x128xf32>
    %123 = tpu.matmul %120, %122, %cst_85 {dimension_numbers = #tpu.dot_dimension_numbers<[1], [0], [0], [1], [0, 0, 1, 1], [], []>} : vector<16x128xf32>, vector<128x128xf32>, vector<16x128xf32> -> vector<16x128xf32>
    %c0_86 = arith.constant 0 : index
    %c1_87 = arith.constant 1 : index
    %c0_88 = arith.constant 0 : index
    %124 = vector.load %arg10[%c0_86, %c1_87, %c0_88] : memref<2x18x128xf32, #tpu.memory_space<vmem>>, vector<1x16x128xf32>
    %125 = vector.shape_cast %124 : vector<1x16x128xf32> to vector<16x128xf32>
    %c1_89 = arith.constant 1 : index
    %c0_90 = arith.constant 0 : index
    %c0_91 = arith.constant 0 : index
    %126 = vector.load %arg5[%c1_89, %c0_90, %c0_91] : memref<3x128x128xf32, #tpu.memory_space<vmem>>, vector<1x128x128xf32>
    %127 = vector.shape_cast %126 : vector<1x128x128xf32> to vector<128x128xf32>
    %cst_92 = arith.constant dense<0.000000e+00> : vector<16x128xf32>
    %128 = tpu.matmul %125, %127, %cst_92 {dimension_numbers = #tpu.dot_dimension_numbers<[1], [0], [0], [1], [0, 0, 1, 1], [], []>} : vector<16x128xf32>, vector<128x128xf32>, vector<16x128xf32> -> vector<16x128xf32>
    %129 = arith.addf %123, %128 : vector<16x128xf32>
    %c0_93 = arith.constant 0 : index
    %c2_94 = arith.constant 2 : index
    %c0_95 = arith.constant 0 : index
    %130 = vector.load %arg10[%c0_93, %c2_94, %c0_95] : memref<2x18x128xf32, #tpu.memory_space<vmem>>, vector<1x16x128xf32>
    %131 = vector.shape_cast %130 : vector<1x16x128xf32> to vector<16x128xf32>
    %c2_96 = arith.constant 2 : index
    %c0_97 = arith.constant 0 : index
    %c0_98 = arith.constant 0 : index
    %132 = vector.load %arg5[%c2_96, %c0_97, %c0_98] : memref<3x128x128xf32, #tpu.memory_space<vmem>>, vector<1x128x128xf32>
    %133 = vector.shape_cast %132 : vector<1x128x128xf32> to vector<128x128xf32>
    %cst_99 = arith.constant dense<0.000000e+00> : vector<16x128xf32>
    %134 = tpu.matmul %131, %133, %cst_99 {dimension_numbers = #tpu.dot_dimension_numbers<[1], [0], [0], [1], [0, 0, 1, 1], [], []>} : vector<16x128xf32>, vector<128x128xf32>, vector<16x128xf32> -> vector<16x128xf32>
    %135 = arith.addf %129, %134 : vector<16x128xf32>
    %136 = vector.broadcast %118 : vector<1x128xf32> to vector<16x128xf32>
    %137 = arith.addf %135, %136 : vector<16x128xf32>
    %c1_100 = arith.constant 1 : index
    %c0_101 = arith.constant 0 : index
    %c0_102 = arith.constant 0 : index
    %138 = vector.load %arg10[%c1_100, %c0_101, %c0_102] : memref<2x18x128xf32, #tpu.memory_space<vmem>>, vector<1x16x128xf32>
    %139 = vector.shape_cast %138 : vector<1x16x128xf32> to vector<16x128xf32>
    %c0_103 = arith.constant 0 : index
    %c0_104 = arith.constant 0 : index
    %c0_105 = arith.constant 0 : index
    %140 = vector.load %arg5[%c0_103, %c0_104, %c0_105] : memref<3x128x128xf32, #tpu.memory_space<vmem>>, vector<1x128x128xf32>
    %141 = vector.shape_cast %140 : vector<1x128x128xf32> to vector<128x128xf32>
    %cst_106 = arith.constant dense<0.000000e+00> : vector<16x128xf32>
    %142 = tpu.matmul %139, %141, %cst_106 {dimension_numbers = #tpu.dot_dimension_numbers<[1], [0], [0], [1], [0, 0, 1, 1], [], []>} : vector<16x128xf32>, vector<128x128xf32>, vector<16x128xf32> -> vector<16x128xf32>
    %c1_107 = arith.constant 1 : index
    %c1_108 = arith.constant 1 : index
    %c0_109 = arith.constant 0 : index
    %143 = vector.load %arg10[%c1_107, %c1_108, %c0_109] : memref<2x18x128xf32, #tpu.memory_space<vmem>>, vector<1x16x128xf32>
    %144 = vector.shape_cast %143 : vector<1x16x128xf32> to vector<16x128xf32>
    %c1_110 = arith.constant 1 : index
    %c0_111 = arith.constant 0 : index
    %c0_112 = arith.constant 0 : index
    %145 = vector.load %arg5[%c1_110, %c0_111, %c0_112] : memref<3x128x128xf32, #tpu.memory_space<vmem>>, vector<1x128x128xf32>
    %146 = vector.shape_cast %145 : vector<1x128x128xf32> to vector<128x128xf32>
    %cst_113 = arith.constant dense<0.000000e+00> : vector<16x128xf32>
    %147 = tpu.matmul %144, %146, %cst_113 {dimension_numbers = #tpu.dot_dimension_numbers<[1], [0], [0], [1], [0, 0, 1, 1], [], []>} : vector<16x128xf32>, vector<128x128xf32>, vector<16x128xf32> -> vector<16x128xf32>
    %148 = arith.addf %142, %147 : vector<16x128xf32>
    %c1_114 = arith.constant 1 : index
    %c2_115 = arith.constant 2 : index
    %c0_116 = arith.constant 0 : index
    %149 = vector.load %arg10[%c1_114, %c2_115, %c0_116] : memref<2x18x128xf32, #tpu.memory_space<vmem>>, vector<1x16x128xf32>
    %150 = vector.shape_cast %149 : vector<1x16x128xf32> to vector<16x128xf32>
    %c2_117 = arith.constant 2 : index
    %c0_118 = arith.constant 0 : index
    %c0_119 = arith.constant 0 : index
    %151 = vector.load %arg5[%c2_117, %c0_118, %c0_119] : memref<3x128x128xf32, #tpu.memory_space<vmem>>, vector<1x128x128xf32>
    %152 = vector.shape_cast %151 : vector<1x128x128xf32> to vector<128x128xf32>
    %cst_120 = arith.constant dense<0.000000e+00> : vector<16x128xf32>
    %153 = tpu.matmul %150, %152, %cst_120 {dimension_numbers = #tpu.dot_dimension_numbers<[1], [0], [0], [1], [0, 0, 1, 1], [], []>} : vector<16x128xf32>, vector<128x128xf32>, vector<16x128xf32> -> vector<16x128xf32>
    %154 = arith.addf %148, %153 : vector<16x128xf32>
    %155 = vector.broadcast %118 : vector<1x128xf32> to vector<16x128xf32>
    %156 = arith.addf %154, %155 : vector<16x128xf32>
    %c0_121 = arith.constant 0 : index
    %c0_122 = arith.constant 0 : index
    %157 = vector.load %arg7[%c0_121, %c0_122] : memref<1x128xf32, #tpu.memory_space<vmem>>, vector<1x128xf32>
    %c0_123 = arith.constant 0 : index
    %c0_124 = arith.constant 0 : index
    %158 = vector.load %arg8[%c0_123, %c0_124] : memref<1x128xf32, #tpu.memory_space<vmem>>, vector<1x128xf32>
    %cst_125 = arith.constant 0.000000e+00 : f32
    %159 = vector.broadcast %cst_125 : f32 to vector<1x128xf32>
    %cst_126 = arith.constant dense<0.000000e+00> : vector<128xf32>
    %160 = vector.multi_reduction <add>, %137, %cst_126 [0] : vector<16x128xf32> to vector<128xf32>
    %161 = vector.shape_cast %160 : vector<128xf32> to vector<1x128xf32>
    %162 = arith.addf %159, %161 : vector<1x128xf32>
    %cst_127 = arith.constant dense<0.000000e+00> : vector<128xf32>
    %163 = vector.multi_reduction <add>, %156, %cst_127 [0] : vector<16x128xf32> to vector<128xf32>
    %164 = vector.shape_cast %163 : vector<128xf32> to vector<1x128xf32>
    %165 = arith.addf %162, %164 : vector<1x128xf32>
    %c8_i32_128 = arith.constant 8 : i32
    %166 = tpu.dynamic_rotate %165 by %c8_i32_128 dim 1 : vector<1x128xf32>, i32 -> vector<1x128xf32>
    %167 = arith.addf %165, %166 : vector<1x128xf32>
    %c16_i32_129 = arith.constant 16 : i32
    %168 = tpu.dynamic_rotate %167 by %c16_i32_129 dim 1 : vector<1x128xf32>, i32 -> vector<1x128xf32>
    %169 = arith.addf %167, %168 : vector<1x128xf32>
    %c32_i32_130 = arith.constant 32 : i32
    %170 = tpu.dynamic_rotate %169 by %c32_i32_130 dim 1 : vector<1x128xf32>, i32 -> vector<1x128xf32>
    %171 = arith.addf %169, %170 : vector<1x128xf32>
    %c64_i32_131 = arith.constant 64 : i32
    %172 = tpu.dynamic_rotate %171 by %c64_i32_131 dim 1 : vector<1x128xf32>, i32 -> vector<1x128xf32>
    %173 = arith.addf %171, %172 : vector<1x128xf32>
    %cst_132 = arith.constant 0.001953125 : f32
    %174 = vector.broadcast %cst_132 : f32 to vector<1x128xf32>
    %175 = arith.mulf %173, %174 : vector<1x128xf32>
    %cst_133 = arith.constant 0.000000e+00 : f32
    %176 = vector.broadcast %cst_133 : f32 to vector<1x128xf32>
    %177 = vector.broadcast %175 : vector<1x128xf32> to vector<16x128xf32>
    %178 = arith.subf %137, %177 : vector<16x128xf32>
    %179 = arith.mulf %178, %178 : vector<16x128xf32>
    %cst_134 = arith.constant dense<0.000000e+00> : vector<128xf32>
    %180 = vector.multi_reduction <add>, %179, %cst_134 [0] : vector<16x128xf32> to vector<128xf32>
    %181 = vector.shape_cast %180 : vector<128xf32> to vector<1x128xf32>
    %182 = arith.addf %176, %181 : vector<1x128xf32>
    %183 = vector.broadcast %175 : vector<1x128xf32> to vector<16x128xf32>
    %184 = arith.subf %156, %183 : vector<16x128xf32>
    %185 = arith.mulf %184, %184 : vector<16x128xf32>
    %cst_135 = arith.constant dense<0.000000e+00> : vector<128xf32>
    %186 = vector.multi_reduction <add>, %185, %cst_135 [0] : vector<16x128xf32> to vector<128xf32>
    %187 = vector.shape_cast %186 : vector<128xf32> to vector<1x128xf32>
    %188 = arith.addf %182, %187 : vector<1x128xf32>
    %c8_i32_136 = arith.constant 8 : i32
    %189 = tpu.dynamic_rotate %188 by %c8_i32_136 dim 1 : vector<1x128xf32>, i32 -> vector<1x128xf32>
    %190 = arith.addf %188, %189 : vector<1x128xf32>
    %c16_i32_137 = arith.constant 16 : i32
    %191 = tpu.dynamic_rotate %190 by %c16_i32_137 dim 1 : vector<1x128xf32>, i32 -> vector<1x128xf32>
    %192 = arith.addf %190, %191 : vector<1x128xf32>
    %c32_i32_138 = arith.constant 32 : i32
    %193 = tpu.dynamic_rotate %192 by %c32_i32_138 dim 1 : vector<1x128xf32>, i32 -> vector<1x128xf32>
    %194 = arith.addf %192, %193 : vector<1x128xf32>
    %c64_i32_139 = arith.constant 64 : i32
    %195 = tpu.dynamic_rotate %194 by %c64_i32_139 dim 1 : vector<1x128xf32>, i32 -> vector<1x128xf32>
    %196 = arith.addf %194, %195 : vector<1x128xf32>
    %cst_140 = arith.constant 0.001953125 : f32
    %197 = vector.broadcast %cst_140 : f32 to vector<1x128xf32>
    %198 = arith.mulf %196, %197 : vector<1x128xf32>
    %cst_141 = arith.constant 9.99999974E-6 : f32
    %199 = vector.broadcast %cst_141 : f32 to vector<1x128xf32>
    %200 = arith.addf %198, %199 : vector<1x128xf32>
    %201 = math.rsqrt %200 : vector<1x128xf32>
    %202 = arith.mulf %157, %201 : vector<1x128xf32>
    %203 = arith.mulf %175, %202 : vector<1x128xf32>
    %204 = arith.subf %158, %203 : vector<1x128xf32>
    %205 = vector.broadcast %202 : vector<1x128xf32> to vector<16x128xf32>
    %206 = arith.mulf %137, %205 : vector<16x128xf32>
    %207 = vector.broadcast %204 : vector<1x128xf32> to vector<16x128xf32>
    %208 = arith.addf %206, %207 : vector<16x128xf32>
    %cst_142 = arith.constant 0.000000e+00 : f32
    %209 = vector.broadcast %cst_142 : f32 to vector<16x128xf32>
    %210 = arith.maximumf %208, %209 : vector<16x128xf32>
    %211 = vector.broadcast %202 : vector<1x128xf32> to vector<16x128xf32>
    %212 = arith.mulf %156, %211 : vector<16x128xf32>
    %213 = vector.broadcast %204 : vector<1x128xf32> to vector<16x128xf32>
    %214 = arith.addf %212, %213 : vector<16x128xf32>
    %cst_143 = arith.constant 0.000000e+00 : f32
    %215 = vector.broadcast %cst_143 : f32 to vector<16x128xf32>
    %216 = arith.maximumf %214, %215 : vector<16x128xf32>
    %c0_144 = arith.constant 0 : index
    %c0_145 = arith.constant 0 : index
    %217 = vector.load %arg9[%c0_144, %c0_145] : memref<32x128xf32, #tpu.memory_space<vmem>>, vector<16x128xf32>
    tpu.vector_store %arg9[%c0_144, %c0_145], %210 {strides = array<i32>} : memref<32x128xf32, #tpu.memory_space<vmem>>, vector<16x128xf32>,
    %c16 = arith.constant 16 : index
    %c0_146 = arith.constant 0 : index
    %218 = vector.load %arg9[%c16, %c0_146] : memref<32x128xf32, #tpu.memory_space<vmem>>, vector<16x128xf32>
    tpu.vector_store %arg9[%c16, %c0_146], %216 {strides = array<i32>} : memref<32x128xf32, #tpu.memory_space<vmem>>, vector<16x128xf32>,
    return
  }
}

</mosaic_0001>

<bundles_post_ra>
// kernel: double_conv.1
= control target key start
LH: loop header
LB: loop body
LE: loop exit
PB: predicated region body
PF: predicated region fallthrough
CT: control target
= control target key end

     0   :  { %s2425_s25 = smov 32   ;;  %s2426_s26 = smov 64   ;;  %s2900_s1 = inlined_call_operand.vmem [shape: f32[3,128,128], index: 1, kind: input, shape index: {}]   ;;  %s2901_s0 = inlined_call_operand.vmem [shape: f32[2,18,128], index: 0, kind: input, shape index: {}]   ;;  %s2902_s2 = inlined_call_operand.vmem [shape: f32[1,128], index: 2, kind: input, shape index: {}]   ;;  %s2903_s5 = inlined_call_operand.vmem [shape: f32[3,128,128], index: 5, kind: input, shape index: {}]   ;;  %s2904_s3 = inlined_call_operand.vmem [shape: f32[1,128], index: 3, kind: input, shape index: {}]   ;;  %s2905_s4 = inlined_call_operand.vmem [shape: f32[1,128], index: 4, kind: input, shape index: {}]   ;;  %s2906_s6 = inlined_call_operand.vmem [shape: f32[1,128], index: 6, kind: input, shape index: {}]   ;;  %s2907_s7 = inlined_call_operand.vmem [shape: f32[1,128], index: 7, kind: input, shape index: {}]   ;;  %s2908_s8 = inlined_call_operand.vmem [shape: f32[1,128], index: 8, kind: input, shape index: {}]   ;;  %s2909_s9 = inlined_call_operand.vmem [shape: f32[32,128], index: 9, kind: output, shape index: {}]  }
   0x1   :  { %v1306_v0 = vld [vmem:[%s2900_s1 + $0x80] sm:$0xff]  ;;  %v1307_v1 = vld [vmem:[%s2900_s1 + $0x88] sm:$0xff]  ;;  %v1308_v2 = vld [vmem:[%s2900_s1 + $0x90] sm:$0xff] }
   0x2   :  { %v2014_v3 = vpack.c.bf16 %v1307_v1, %v1306_v0  ;;  %v1309_v4 = vld [vmem:[%s2900_s1 + $0x98] sm:$0xff]  ;;  %v1310_v6 = vld [vmem:[%s2900_s1 + $0xa0] sm:$0xff]  ;;  %v1311_v7 = vld [vmem:[%s2900_s1 + $0xa8] sm:$0xff] }
   0x3   :  { %v2018_v5 = vpack.c.bf16 %v1309_v4, %v1308_v2  ;;  %v2022_v8 = vpack.c.bf16 %v1311_v7, %v1310_v6  ;;  %v51_v9 = vld [vmem:[%s2901_s0 + $0x1] sm:$0xff]  ;;  %v1312_v10 = vld [vmem:[%s2900_s1 + $0xb0] sm:$0xff]  ;;  %v1313_v11 = vld [vmem:[%s2900_s1 + $0xb8] sm:$0xff] }
   0x4   :  { %2015 = vmatprep.subr.bf16.mxu0 %v2014_v3  ;;  %2111 = vmatprep.subr.bf16.mxu1 %v2014_v3  ;;  %v1341_v12 = vld [vmem:[%s2901_s0 + $0x19] sm:$0xff]  ;;  %v2026_v13 = vpack.c.bf16 %v1313_v11, %v1312_v10  ;;  %v1315_v15 = vld [vmem:[%s2900_s1 + $0xc8] sm:$0xff]  ;;  %v1316_v17 = vld [vmem:[%s2900_s1 + $0xd0] sm:$0xff] }
   0x5   :  { %2017 = vmatpush3.bf16.msra.mxu0 %v2014_v3  ;;  %2113 = vmatpush3.bf16.msra.mxu1 %v2014_v3  ;;  %v1314_v14 = vld [vmem:[%s2900_s1 + $0xc0] sm:$0xff]  ;;  %v1317_v18 = vld [vmem:[%s2900_s1 + $0xd8] sm:$0xff]  ;;  %v1319_v21 = vld [vmem:[%s2900_s1 + $0xe8] sm:$0xff] }
   0x6   :  { %2019 = vmatprep.subr.bf16.mxu0 %v2018_v5  ;;  %2115 = vmatprep.subr.bf16.mxu1 %v2018_v5  ;;  %v2030_v16 = vpack.c.bf16 %v1315_v15, %v1314_v14  ;;  %v2034_v19 = vpack.c.bf16 %v1317_v18, %v1316_v17  ;;  %v1318_v20 = vld [vmem:[%s2900_s1 + $0xe0] sm:$0xff]  ;;  %v1320_v23 = vld [vmem:[%s2900_s1 + $0xf0] sm:$0xff]  ;;  %v1321_v24 = vld [vmem:[%s2900_s1 + $0xf8] sm:$0xff] }
   0x7   :  { %1626 = vmatprep.mubr.f32.mxu0 %v51_v9  ;;  %1731 = vmatprep.mubr.f32.mxu1 %v1341_v12  ;;  %v2038_v22 = vpack.c.bf16 %v1319_v21, %v1318_v20  ;;  %v2042_v25 = vpack.c.bf16 %v1321_v24, %v1320_v23  ;;  %v35_v26 = vld [vmem:[%s2900_s1] sm:$0xff]  ;;  %v36_v27 = vld [vmem:[%s2900_s1 + $0x8] sm:$0xff]  ;;  %v37_v29 = vld [vmem:[%s2900_s1 + $0x10] sm:$0xff] }
   0x8   :  { %v2046_v28 = vpack.c.bf16 %v36_v27, %v35_v26  ;;  %v38_v30 = vld [vmem:[%s2900_s1 + $0x18] sm:$0xff]  ;;  %v52_v31 = vld [vmem:[%s2901_s0 + $0x9] sm:$0xff]  ;;  %v1342_v32 = vld [vmem:[%s2901_s0 + $0x21] sm:$0xff] }
   0x9   :  { %2021 = vmatpush3.bf16.msra.mxu0 %v2018_v5  ;;  %2117 = vmatpush3.bf16.msra.mxu1 %v2018_v5  ;;  %v2050_v33 = vpack.c.bf16 %v38_v30, %v37_v29  ;;  %v39_v34 = vld [vmem:[%s2900_s1 + $0x20] sm:$0xff]  ;;  %v40_v35 = vld [vmem:[%s2900_s1 + $0x28] sm:$0xff]  ;;  %v1339_v37 = vld [vmem:[%s2901_s0 + $0x18] sm:$0xff] }
   0xa   :  { %2023 = vmatprep.subr.bf16.mxu0 %v2022_v8  ;;  %2119 = vmatprep.subr.bf16.mxu1 %v2022_v8  ;;  %v33_v36 = vld [vmem:[%s2901_s0] sm:$0xff]  ;;  %v2054_v38 = vpack.c.bf16 %v40_v35, %v39_v34  ;;  %v41_v39 = vld [vmem:[%s2900_s1 + $0x30] sm:$0xff]  ;;  %v42_v40 = vld [vmem:[%s2900_s1 + $0x38] sm:$0xff] }
   0xb   :  { %v2058_v41 = vpack.c.bf16 %v42_v40, %v41_v39  ;;  %v43_v42 = vld [vmem:[%s2900_s1 + $0x40] sm:$0xff]  ;;  %v44_v43 = vld [vmem:[%s2900_s1 + $0x48] sm:$0xff]  ;;  %v45_v45 = vld [vmem:[%s2900_s1 + $0x50] sm:$0xff] }
   0xc   :  { %v2062_v44 = vpack.c.bf16 %v44_v43, %v43_v42  ;;  %v46_v46 = vld [vmem:[%s2900_s1 + $0x58] sm:$0xff]  ;;  %v47_v48 = vld [vmem:[%s2900_s1 + $0x60] sm:$0xff]  ;;  %v48_v49 = vld [vmem:[%s2900_s1 + $0x68] sm:$0xff] }
   0xd   :  { %2025 = vmatpush3.bf16.msra.mxu0 %v2022_v8  ;;  %2121 = vmatpush3.bf16.msra.mxu1 %v2022_v8  ;;  %v2066_v47 = vpack.c.bf16 %v46_v46, %v45_v45  ;;  %v2070_v50 = vpack.c.bf16 %v48_v49, %v47_v48  ;;  %v49_v51 = vld [vmem:[%s2900_s1 + $0x70] sm:$0xff]  ;;  %v50_v52 = vld [vmem:[%s2900_s1 + $0x78] sm:$0xff]  ;;  %v1322_v54 = vld [vmem:[%s2900_s1 + $0x100] sm:$0xff] }
   0xe   :  { %2027 = vmatprep.subr.bf16.mxu0 %v2026_v13  ;;  %2123 = vmatprep.subr.bf16.mxu1 %v2026_v13  ;;  %v2074_v53 = vpack.c.bf16 %v50_v52, %v49_v51  ;;  %v1323_v55 = vld [vmem:[%s2900_s1 + $0x108] sm:$0xff]  ;;  %v1324_v57 = vld [vmem:[%s2900_s1 + $0x110] sm:$0xff]  ;;  %v1325_v58 = vld [vmem:[%s2900_s1 + $0x118] sm:$0xff] }
   0xf   :  { %v2078_v56 = vpack.c.bf16 %v1323_v55, %v1322_v54  ;;  %v34_v59 = vld [vmem:[%s2901_s0 + $0x8] sm:$0xff]  ;;  %v1340_v60 = vld [vmem:[%s2901_s0 + $0x20] sm:$0xff]  ;;  %v2082_v61 = vpack.c.bf16 %v1325_v58, %v1324_v57  ;;  %v1328_v3 = vld [vmem:[%s2900_s1 + $0x130] sm:$0xff] }
  0x10   :  { %v1326_v62 = vld [vmem:[%s2900_s1 + $0x120] sm:$0xff]  ;;  %v1327_v63 = vld [vmem:[%s2900_s1 + $0x128] sm:$0xff]  ;;  %v1329_v4 = vld [vmem:[%s2900_s1 + $0x138] sm:$0xff] }
  0x11   :  { %2029 = vmatpush3.bf16.msra.mxu0 %v2026_v13  ;;  %2125 = vmatpush3.bf16.msra.mxu1 %v2026_v13  ;;  %v220_v0 = vld [vmem:[%s2901_s0 + $0x2] sm:$0xff]  ;;  %v1343_v1 = vld [vmem:[%s2901_s0 + $0x1a] sm:$0xff]  ;;  %v2086_v2 = vpack.c.bf16 %v1327_v63, %v1326_v62  ;;  %v2090_v5 = vpack.c.bf16 %v1329_v4, %v1328_v3  ;;  %v1332_v9 = vld [vmem:[%s2900_s1 + $0x150] sm:$0xff] }
  0x12   :  { %2031 = vmatprep.subr.bf16.mxu0 %v2030_v16  ;;  %2127 = vmatprep.subr.bf16.mxu1 %v2030_v16  ;;  %v1330_v6 = vld [vmem:[%s2900_s1 + $0x140] sm:$0xff]  ;;  %v1331_v7 = vld [vmem:[%s2900_s1 + $0x148] sm:$0xff]  ;;  %v1333_v10 = vld [vmem:[%s2900_s1 + $0x158] sm:$0xff] }
  0x13   :  { %v2094_v8 = vpack.c.bf16 %v1331_v7, %v1330_v6  ;;  %v2098_v11 = vpack.c.bf16 %v1333_v10, %v1332_v9  ;;  %v1334_v12 = vld [vmem:[%s2900_s1 + $0x160] sm:$0xff]  ;;  %v1335_v13 = vld [vmem:[%s2900_s1 + $0x168] sm:$0xff]  ;;  %v1336_v15 = vld [vmem:[%s2900_s1 + $0x170] sm:$0xff] }
  0x14   :  { %v2102_v14 = vpack.c.bf16 %v1335_v13, %v1334_v12  ;;  %v221_v18 = vld [vmem:[%s2901_s0 + $0xa] sm:$0xff]  ;;  %v1338_v20 = vld [vmem:[%s2902_s2] ss:$0 sm:$0xff]  ;;  %s2424_s2 = smov 16  }
  0x15   :  { %2033 = vmatpush3.bf16.msra.mxu0 %v2030_v16  ;;  %2129 = vmatpush3.bf16.msra.mxu1 %v2030_v16  ;;  %v1337_v16 = vld [vmem:[%s2900_s1 + $0x178] sm:$0xff] }
  0x16   :  { %2035 = vmatprep.subr.bf16.mxu0 %v2034_v19  ;;  %2131 = vmatprep.subr.bf16.mxu1 %v2034_v19  ;;  %v2106_v17 = vpack.c.bf16 %v1337_v16, %v1336_v15 }
  0x19   :  { %2037 = vmatpush3.bf16.msra.mxu0 %v2034_v19  ;;  %2133 = vmatpush3.bf16.msra.mxu1 %v2034_v19  ;;  %v1344_v19 = vld [vmem:[%s2901_s0 + $0x22] sm:$0xff]  ;;  %s2423_s0 = smov 8  }
  0x1a   :  { %2039 = vmatprep.subr.bf16.mxu0 %v2038_v22  ;;  %2135 = vmatprep.subr.bf16.mxu1 %v2038_v22 }
  0x1d   :  { %2041 = vmatpush3.bf16.msra.mxu0 %v2038_v22  ;;  %2137 = vmatpush3.bf16.msra.mxu1 %v2038_v22 }
  0x1e   :  { %2043 = vmatprep.subr.bf16.mxu0 %v2042_v25  ;;  %2139 = vmatprep.subr.bf16.mxu1 %v2042_v25 }
  0x21   :  { %2045 = vmatpush3.bf16.msra.mxu0 %v2042_v25  ;;  %2141 = vmatpush3.bf16.msra.mxu1 %v2042_v25 }
  0x22   :  { %2047 = vmatprep.subr.bf16.mxu0 %v2046_v28  ;;  %2143 = vmatprep.subr.bf16.mxu1 %v2046_v28 }
  0x24   :  { %1627 = vmatmul.mubr.f32.vlgmr.msra.gmra.mrb[0].mxu0 %v52_v31  ;;  %1732 = vmatmul.mubr.f32.vlgmr.msra.gmra.mrb[0].mxu1 %v1342_v32 }
  0x25   :  { %2049 = vmatpush3.bf16.msra.mxu0 %v2046_v28  ;;  %2145 = vmatpush3.bf16.msra.mxu1 %v2046_v28 }
  0x26   :  { %2051 = vmatprep.subr.bf16.mxu0 %v2050_v33  ;;  %2147 = vmatprep.subr.bf16.mxu1 %v2050_v33 }
  0x27   :  { %1661 = vmatprep.mubr.f32.mxu0 %v33_v36  ;;  %1766 = vmatprep.mubr.f32.mxu1 %v1339_v37 }
  0x29   :  { %2053 = vmatpush3.bf16.msra.mxu0 %v2050_v33  ;;  %2149 = vmatpush3.bf16.msra.mxu1 %v2050_v33 }
  0x2a   :  { %2055 = vmatprep.subr.bf16.mxu0 %v2054_v38  ;;  %2151 = vmatprep.subr.bf16.mxu1 %v2054_v38 }
  0x2d   :  { %2057 = vmatpush3.bf16.msra.mxu0 %v2054_v38  ;;  %2153 = vmatpush3.bf16.msra.mxu1 %v2054_v38 }
  0x2e   :  { %2059 = vmatprep.subr.bf16.mxu0 %v2058_v41  ;;  %2155 = vmatprep.subr.bf16.mxu1 %v2058_v41 }
  0x31   :  { %2061 = vmatpush3.bf16.msra.mxu0 %v2058_v41  ;;  %2157 = vmatpush3.bf16.msra.mxu1 %v2058_v41 }
  0x32   :  { %2063 = vmatprep.subr.bf16.mxu0 %v2062_v44  ;;  %2159 = vmatprep.subr.bf16.mxu1 %v2062_v44 }
  0x35   :  { %2065 = vmatpush3.bf16.msra.mxu0 %v2062_v44  ;;  %2161 = vmatpush3.bf16.msra.mxu1 %v2062_v44 }
  0x36   :  { %2067 = vmatprep.subr.bf16.mxu0 %v2066_v47  ;;  %2163 = vmatprep.subr.bf16.mxu1 %v2066_v47 }
  0x39   :  { %2069 = vmatpush3.bf16.msra.mxu0 %v2066_v47  ;;  %2165 = vmatpush3.bf16.msra.mxu1 %v2066_v47 }
  0x3a   :  { %2071 = vmatprep.subr.bf16.mxu0 %v2070_v50  ;;  %2167 = vmatprep.subr.bf16.mxu1 %v2070_v50 }
  0x3d   :  { %2073 = vmatpush3.bf16.msra.mxu0 %v2070_v50  ;;  %2169 = vmatpush3.bf16.msra.mxu1 %v2070_v50  ;;  %v591_v50 = vlaneseq }
  0x3e   :  { %2075 = vmatprep.subr.bf16.mxu0 %v2074_v53  ;;  %2171 = vmatprep.subr.bf16.mxu1 %v2074_v53 }
  0x3f   :  { %v592_v51 = vshrl.u32 %v591_v50, 7  ;;  %v673_v50 = vld [vmem:[%s2903_s5] sm:$0xff] }
  0x41   :  { %2077 = vmatpush3.bf16.msra.mxu0 %v2074_v53  ;;  %2173 = vmatpush3.bf16.msra.mxu1 %v2074_v53  ;;  %v2677_v53 = vsub.s32 0, %v592_v51  ;;  %v674_v51 = vld [vmem:[%s2903_s5 + $0x8] sm:$0xff] }
  0x42   :  { %2079 = vmatprep.subr.bf16.mxu0 %v2078_v56  ;;  %2175 = vmatprep.subr.bf16.mxu1 %v2078_v56 }
  0x44   :  { %1662 = vmatmul.mubr.f32.vlgmr.msra.gmra.mrb[0].mxu0 %v34_v59  ;;  %1767 = vmatmul.mubr.f32.vlgmr.msra.gmra.mrb[0].mxu1 %v1340_v60 }
  0x45   :  { %2081 = vmatpush3.bf16.msra.mxu0 %v2078_v56  ;;  %2177 = vmatpush3.bf16.msra.mxu1 %v2078_v56 }
  0x46   :  { %2083 = vmatprep.subr.bf16.mxu0 %v2082_v61  ;;  %2179 = vmatprep.subr.bf16.mxu1 %v2082_v61 }
  0x47   :  { %1696 = vmatprep.mubr.f32.mxu0 %v220_v0  ;;  %1801 = vmatprep.mubr.f32.mxu1 %v1343_v1 }
  0x49   :  { %2085 = vmatpush3.bf16.msra.mxu0 %v2082_v61  ;;  %2181 = vmatpush3.bf16.msra.mxu1 %v2082_v61 }
  0x4a   :  { %2087 = vmatprep.subr.bf16.mxu0 %v2086_v2  ;;  %2183 = vmatprep.subr.bf16.mxu1 %v2086_v2 }
  0x4d   :  { %2089 = vmatpush3.bf16.msra.mxu0 %v2086_v2  ;;  %2185 = vmatpush3.bf16.msra.mxu1 %v2086_v2 }
  0x4e   :  { %2091 = vmatprep.subr.bf16.mxu0 %v2090_v5  ;;  %2187 = vmatprep.subr.bf16.mxu1 %v2090_v5 }
  0x51   :  { %2093 = vmatpush3.bf16.msra.mxu0 %v2090_v5  ;;  %2189 = vmatpush3.bf16.msra.mxu1 %v2090_v5 }
  0x52   :  { %2095 = vmatprep.subr.bf16.mxu0 %v2094_v8  ;;  %2191 = vmatprep.subr.bf16.mxu1 %v2094_v8 }
  0x55   :  { %2097 = vmatpush3.bf16.msra.mxu0 %v2094_v8  ;;  %2193 = vmatpush3.bf16.msra.mxu1 %v2094_v8 }
  0x56   :  { %2099 = vmatprep.subr.bf16.mxu0 %v2098_v11  ;;  %2195 = vmatprep.subr.bf16.mxu1 %v2098_v11 }
  0x59   :  { %2101 = vmatpush3.bf16.msra.mxu0 %v2098_v11  ;;  %2197 = vmatpush3.bf16.msra.mxu1 %v2098_v11 }
  0x5a   :  { %2103 = vmatprep.subr.bf16.mxu0 %v2102_v14  ;;  %2199 = vmatprep.subr.bf16.mxu1 %v2102_v14 }
  0x5d   :  { %2105 = vmatpush3.bf16.msra.mxu0 %v2102_v14  ;;  %2201 = vmatpush3.bf16.msra.mxu1 %v2102_v14 }
  0x5e   :  { %2107 = vmatprep.subr.bf16.mxu0 %v2106_v17  ;;  %2203 = vmatprep.subr.bf16.mxu1 %v2106_v17 }
  0x61   :  { %2109 = vmatpush3.bf16.msra.mxu0 %v2106_v17  ;;  %2205 = vmatpush3.bf16.msra.mxu1 %v2106_v17 }
  0x64   :  { %1697 = vmatmul.mubr.f32.vlgmr.msra.gmra.mrb[0].mxu0 %v221_v18  ;;  %1802 = vmatmul.mubr.f32.vlgmr.msra.gmra.mrb[0].mxu1 %v1344_v19 }
 0x137   :  { %v1698_v21 = vpop.f32.mrb[0].mxu0  ;;  %v1803_v22 = vpop.f32.mrb[0].mxu1 }
 0x138   :  { %v2661_v23 = vadd.f32 %v1698_v21, %v1338_v20  ;;  %v2663_v24 = vadd.f32 %v1803_v22, %v1338_v20  ;;  %v305_v25 = vpop.f32.mrb[1].mxu0  ;;  %v547_v26 = vpop.f32.mrb[1].mxu1  ;;  %v1346_v21 = vld [vmem:[%s2903_s5 + $0x88] sm:$0xff] }
 0x139   :  { %v2665_v27 = vadd.f32 %v1338_v20, %v305_v25  ;;  %v2667_v28 = vadd.f32 %v1338_v20, %v547_v26  ;;  %v1345_v20 = vld [vmem:[%s2903_s5 + $0x80] sm:$0xff]  ;;  %v1347_v25 = vld [vmem:[%s2903_s5 + $0x90] sm:$0xff]  ;;  %v1348_v26 = vld [vmem:[%s2903_s5 + $0x98] sm:$0xff] }
 0x13a   :  { %v2206_v22 = vpack.c.bf16 %v1346_v21, %v1345_v20 }
 0x13b   :  { %v562_v29 = vadd.f32 %v2661_v23, %v2665_v27  ;;  %v570_v30 = vadd.f32 %v2663_v24, %v2667_v28 }
 0x13c   :  { %2207 = vmatprep.subr.bf16.mxu0 %v2206_v22  ;;  %2303 = vmatprep.subr.bf16.mxu1 %v2206_v22 }
 0x13d   :  { %v563_v31 = vrot.slane %v562_v29, 4  ;;  %v571_v32 = vrot.slane %v570_v30, 4  ;;  %2209 = vmatpush3.bf16.msra.mxu0 %v2206_v22  ;;  %2305 = vmatpush3.bf16.msra.mxu1 %v2206_v22  ;;  %v681_v22 = vld [vmem:[%s2903_s5 + $0x40] sm:$0xff] }
 0x13f   :  { %v564_v33 = vadd.f32 %v563_v31, %v562_v29  ;;  %v572_v34 = vadd.f32 %v571_v32, %v570_v30  ;;  %v2210_v29 = vpack.c.bf16 %v1348_v26, %v1347_v25  ;;  %v1349_v30 = vld [vmem:[%s2903_s5 + $0xa0] sm:$0xff]  ;;  %v1350_v31 = vld [vmem:[%s2903_s5 + $0xa8] sm:$0xff] }
 0x140   :  { %v2214_v32 = vpack.c.bf16 %v1350_v31, %v1349_v30  ;;  %v682_v25 = vld [vmem:[%s2903_s5 + $0x48] sm:$0xff]  ;;  %v684_v30 = vld [vmem:[%s2903_s5 + $0x58] sm:$0xff] }
 0x141   :  { %v565_v35 = vrot.slane %v564_v33, 2  ;;  %v573_v36 = vrot.slane %v572_v34, 2  ;;  %2211 = vmatprep.subr.bf16.mxu0 %v2210_v29  ;;  %2307 = vmatprep.subr.bf16.mxu1 %v2210_v29  ;;  %v2254_v26 = vpack.c.bf16 %v682_v25, %v681_v22 }
 0x142   :  { %2213 = vmatpush3.bf16.msra.mxu0 %v2210_v29  ;;  %2309 = vmatpush3.bf16.msra.mxu1 %v2210_v29  ;;  %v683_v29 = vld [vmem:[%s2903_s5 + $0x50] sm:$0xff] }
 0x143   :  { %v566_v37 = vadd.f32 %v565_v35, %v564_v33  ;;  %v574_v38 = vadd.f32 %v573_v36, %v572_v34  ;;  %2215 = vmatprep.subr.bf16.mxu0 %v2214_v32  ;;  %2311 = vmatprep.subr.bf16.mxu1 %v2214_v32  ;;  %v1351_v33 = vld [vmem:[%s2903_s5 + $0xb0] sm:$0xff]  ;;  %v1352_v34 = vld [vmem:[%s2903_s5 + $0xb8] sm:$0xff]  ;;  %v2258_v31 = vpack.c.bf16 %v684_v30, %v683_v29 }
 0x144   :  { %v2218_v35 = vpack.c.bf16 %v1352_v34, %v1351_v33  ;;  %v686_v33 = vld [vmem:[%s2903_s5 + $0x68] sm:$0xff] }
 0x145   :  { %v567_v39 = vrot.slane %v566_v37, 1  ;;  %v575_v40 = vrot.slane %v574_v38, 1 }
 0x146   :  { %2217 = vmatpush3.bf16.msra.mxu0 %v2214_v32  ;;  %2313 = vmatpush3.bf16.msra.mxu1 %v2214_v32  ;;  %v685_v32 = vld [vmem:[%s2903_s5 + $0x60] sm:$0xff] }
 0x147   :  { %v568_v41 = vadd.f32 %v567_v39, %v566_v37  ;;  %v576_v42 = vadd.f32 %v575_v40, %v574_v38  ;;  %2219 = vmatprep.subr.bf16.mxu0 %v2218_v35  ;;  %2315 = vmatprep.subr.bf16.mxu1 %v2218_v35  ;;  %v1353_v38 = vld [vmem:[%s2903_s5 + $0xc0] sm:$0xff]  ;;  %v1354_v39 = vld [vmem:[%s2903_s5 + $0xc8] sm:$0xff]  ;;  %v2262_v34 = vpack.c.bf16 %v686_v33, %v685_v32 }
 0x148   :  { %v2222_v40 = vpack.c.bf16 %v1354_v39, %v1353_v38  ;;  %v1361_v38 = vld [vmem:[%s2903_s5 + $0x100] sm:$0xff]  ;;  %v1362_v39 = vld [vmem:[%s2903_s5 + $0x108] sm:$0xff] }
 0x149   :  { %v577_v43 = vadd.f32 %v576_v42, %v568_v41  ;;  %v1355_v41 = vld [vmem:[%s2903_s5 + $0xd0] sm:$0xff]  ;;  %v1356_v42 = vld [vmem:[%s2903_s5 + $0xd8] sm:$0xff] }
 0x14a   :  { %2221 = vmatpush3.bf16.msra.mxu0 %v2218_v35  ;;  %2317 = vmatpush3.bf16.msra.mxu1 %v2218_v35  ;;  %v687_v35 = vld [vmem:[%s2903_s5 + $0x70] sm:$0xff] }
 0x14b   :  { %578 = vrot.lane.b32.xlu0 %v577_v43, %s2423_s0  ;;  %2223 = vmatprep.subr.bf16.mxu0 %v2222_v40 }
 0x14c   :  { %2319 = vmatprep.subr.bf16.mxu1 %v2222_v40 }
 0x14e   :  { %2225 = vmatpush3.bf16.msra.mxu0 %v2222_v40  ;;  %2321 = vmatpush3.bf16.msra.mxu1 %v2222_v40  ;;  %v2270_v40 = vpack.c.bf16 %v1362_v39, %v1361_v38 }
 0x1bd   :  { %v579_v44 = vpop.permute.xlu0 %578 }
 0x1be   :  { %v580_v45 = vadd.f32 %v579_v44, %v577_v43  ;;  %v2226_v43 = vpack.c.bf16 %v1356_v42, %v1355_v41  ;;  %v1357_v44 = vld [vmem:[%s2903_s5 + $0xe0] sm:$0xff]  ;;  %v1363_v41 = vld [vmem:[%s2903_s5 + $0x110] sm:$0xff]  ;;  %v1364_v42 = vld [vmem:[%s2903_s5 + $0x118] sm:$0xff] }
 0x1c0   :  { %581 = vrot.lane.b32.xlu0 %v580_v45, %s2424_s2  ;;  %2227 = vmatprep.subr.bf16.mxu0 %v2226_v43 }
 0x1c1   :  { %2323 = vmatprep.subr.bf16.mxu1 %v2226_v43  ;;  %2229 = vmatpush3.bf16.msra.mxu0 %v2226_v43 }
 0x1c2   :  { %2325 = vmatpush3.bf16.msra.mxu1 %v2226_v43  ;;  %v1365_v43 = vld [vmem:[%s2903_s5 + $0x120] sm:$0xff] }
 0x232   :  { %v582_v46 = vpop.permute.xlu0 %581 }
 0x233   :  { %v583_v47 = vadd.f32 %v582_v46, %v580_v45  ;;  %v1358_v45 = vld [vmem:[%s2903_s5 + $0xe8] sm:$0xff] }
 0x234   :  { %v2230_v46 = vpack.c.bf16 %v1358_v45, %v1357_v44 }
 0x235   :  { %584 = vrot.lane.b32.xlu1 %v583_v47, %s2425_s25 }
 0x236   :  { %2231 = vmatprep.subr.bf16.mxu0 %v2230_v46  ;;  %2327 = vmatprep.subr.bf16.mxu1 %v2230_v46 }
 0x237   :  { %2233 = vmatpush3.bf16.msra.mxu0 %v2230_v46  ;;  %2329 = vmatpush3.bf16.msra.mxu1 %v2230_v46  ;;  %v2274_v46 = vpack.c.bf16 %v1364_v42, %v1363_v41 }
 0x2a7   :  { %v585_v48 = vpop.permute.xlu1 %584 }
 0x2a8   :  { %v586_v49 = vadd.f32 %v585_v48, %v583_v47  ;;  %v1359_v47 = vld [vmem:[%s2903_s5 + $0xf0] sm:$0xff]  ;;  %v1360_v48 = vld [vmem:[%s2903_s5 + $0xf8] sm:$0xff] }
 0x2aa   :  { %587 = vrot.lane.b32.xlu1 %v586_v49, %s2426_s26 }
 0x31c   :  { %v588_v52 = vpop.permute.xlu1 %587 }
 0x31d   :  { %v589_v54 = vadd.f32 %v588_v52, %v586_v49  ;;  %v2234_v49 = vpack.c.bf16 %v1360_v48, %v1359_v47  ;;  %v2238_v52 = vpack.c.bf16 %v674_v51, %v673_v50  ;;  %v1366_v47 = vld [vmem:[%s2903_s5 + $0x128] sm:$0xff]  ;;  %v1367_v51 = vld [vmem:[%s2903_s5 + $0x130] sm:$0xff] }
 0x31e   :  { %v2278_v50 = vpack.c.bf16 %v1366_v47, %v1365_v43 }
 0x31f   :  { %v2679_v55 = vmul.f32 0.001953125, %v589_v54  ;;  %2235 = vmatprep.subr.bf16.mxu0 %v2234_v49  ;;  %2331 = vmatprep.subr.bf16.mxu1 %v2234_v49  ;;  %v2427_v54 = vmov 0.0  }
 0x320   :  { %2237 = vmatpush3.bf16.msra.mxu0 %v2234_v49  ;;  %2333 = vmatpush3.bf16.msra.mxu1 %v2234_v49  ;;  %661 = vst [vmem:[#allocation2] sm:$0x1] %v2427_v54  ;;  %662 = vst [vmem:[#allocation2 + $0x11] sm:$0x1] %v2427_v54 }
 0x321   :  { %v594_v56 = vrot.slane %v2679_v55, %v2677_v53  ;;  %2239 = vmatprep.subr.bf16.mxu0 %v2238_v52  ;;  %2335 = vmatprep.subr.bf16.mxu1 %v2238_v52  ;;  %666 = vst [vmem:[#allocation2 + $0x18] sm:$0x1] %v2427_v54  ;;  %667 = vst [vmem:[#allocation2 + $0x29] sm:$0x1] %v2427_v54 }
 0x323   :  { %v595_v57 = vsub.f32 %v2665_v27, %v594_v56  ;;  %v596_v58 = vsub.f32 %v2661_v23, %v594_v56  ;;  %v607_v59 = vsub.f32 %v2667_v28, %v594_v56  ;;  %v608_v60 = vsub.f32 %v2663_v24, %v594_v56 }
 0x325   :  { %v597_v61 = vmul.f32 %v595_v57, %v595_v57  ;;  %v598_v62 = vmul.f32 %v596_v58, %v596_v58  ;;  %v609_v63 = vmul.f32 %v607_v59, %v607_v59  ;;  %v610_v0 = vmul.f32 %v608_v60, %v608_v60  ;;  %v560_v60 = vld [vmem:[%s2904_s3] sm:$0x1] }
 0x327   :  { %v599_v1 = vadd.f32 %v598_v62, %v597_v61  ;;  %v611_v2 = vadd.f32 %v610_v0, %v609_v63  ;;  %v561_v63 = vld [vmem:[%s2905_s4] sm:$0x1] }
 0x329   :  { %v600_v3 = vrot.slane %v599_v1, 4  ;;  %v612_v4 = vrot.slane %v611_v2, 4 }
 0x32b   :  { %v601_v5 = vadd.f32 %v600_v3, %v599_v1  ;;  %v613_v6 = vadd.f32 %v612_v4, %v611_v2 }
 0x32d   :  { %v602_v7 = vrot.slane %v601_v5, 2  ;;  %v614_v8 = vrot.slane %v613_v6, 2 }
 0x32f   :  { %v603_v9 = vadd.f32 %v602_v7, %v601_v5  ;;  %v615_v10 = vadd.f32 %v614_v8, %v613_v6 }
 0x331   :  { %v604_v11 = vrot.slane %v603_v9, 1  ;;  %v616_v12 = vrot.slane %v615_v10, 1 }
 0x333   :  { %v605_v13 = vadd.f32 %v604_v11, %v603_v9  ;;  %v617_v14 = vadd.f32 %v616_v12, %v615_v10 }
 0x335   :  { %v618_v15 = vadd.f32 %v617_v14, %v605_v13 }
 0x337   :  { %619 = vrot.lane.b32.xlu0 %v618_v15, %s2423_s0 }
 0x3a9   :  { %v620_v16 = vpop.permute.xlu0 %619 }
 0x3aa   :  { %v621_v17 = vadd.f32 %v620_v16, %v618_v15 }
 0x3ac   :  { %622 = vrot.lane.b32.xlu1 %v621_v17, %s2424_s2 }
 0x41e   :  { %v623_v18 = vpop.permute.xlu1 %622 }
 0x41f   :  { %v624_v19 = vadd.f32 %v623_v18, %v621_v17  ;;  %v679_v17 = vld [vmem:[%s2903_s5 + $0x30] sm:$0xff]  ;;  %v680_v18 = vld [vmem:[%s2903_s5 + $0x38] sm:$0xff] }
 0x420   :  { %v2250_v21 = vpack.c.bf16 %v680_v18, %v679_v17 }
 0x421   :  { %625 = vrot.lane.b32.xlu0 %v624_v19, %s2425_s25 }
 0x493   :  { %v626_v36 = vpop.permute.xlu0 %625 }
 0x494   :  { %v627_v37 = vadd.f32 %v626_v36, %v624_v19  ;;  %v688_v36 = vld [vmem:[%s2903_s5 + $0x78] sm:$0xff] }
 0x496   :  { %628 = vrot.lane.b32.xlu1 %v627_v37, %s2426_s26 }
 0x508   :  { %v629_v56 = vpop.permute.xlu1 %628 }
 0x509   :  { %v630_v57 = vadd.f32 %v629_v56, %v627_v37  ;;  %v2266_v37 = vpack.c.bf16 %v688_v36, %v687_v35  ;;  %v1369_v56 = vld [vmem:[%s2903_s5 + $0x140] sm:$0xff] }
 0x50b   :  { %v631_v58 = vmul.f32 0.001953125, %v630_v57  ;;  %v1370_v57 = vld [vmem:[%s2903_s5 + $0x148] sm:$0xff] }
 0x50d   :  { %v632_v59 = vadd.f32 1e-05, %v631_v58  ;;  %v2286_v58 = vpack.c.bf16 %v1370_v57, %v1369_v56 }
 0x50f   :  { %2419 = vrsqrt.f32 %v632_v59  ;;  %v1371_v59 = vld [vmem:[%s2903_s5 + $0x150] sm:$0xff] }
 0x519   :  { %v2420_v61 = vpop.eup %2419 }
 0x51a   :  { %v634_v62 = vmul.f32 %v2420_v61, %v560_v60  ;;  %v1372_v60 = vld [vmem:[%s2903_s5 + $0x158] sm:$0xff] }
 0x51b   :  { %v2290_v61 = vpack.c.bf16 %v1372_v60, %v1371_v59 }
 0x51c   :  { %v635_v0 = vmul.f32 %v634_v62, %v2679_v55  ;;  %v641_v1 = vrot.slane %v634_v62, %v2677_v53  ;;  %v675_v55 = vld [vmem:[%s2903_s5 + $0x10] sm:$0xff]  ;;  %v1373_v62 = vld [vmem:[%s2903_s5 + $0x160] sm:$0xff] }
 0x51e   :  { %v636_v2 = vsub.f32 %v561_v63, %v635_v0  ;;  %v643_v3 = vmul.f32 %v641_v1, %v2665_v27  ;;  %v644_v4 = vmul.f32 %v641_v1, %v2661_v23  ;;  %v655_v6 = vmul.f32 %v641_v1, %v2667_v28  ;;  %v676_v27 = vld [vmem:[%s2903_s5 + $0x18] sm:$0xff]  ;;  %v678_v28 = vld [vmem:[%s2903_s5 + $0x28] sm:$0xff] }
 0x51f   :  { %v656_v7 = vmul.f32 %v641_v1, %v2663_v24  ;;  %v2242_v15 = vpack.c.bf16 %v676_v27, %v675_v55  ;;  %v677_v24 = vld [vmem:[%s2903_s5 + $0x20] sm:$0xff]  ;;  %v1374_v63 = vld [vmem:[%s2903_s5 + $0x168] sm:$0xff]  ;;  %v1375_v1 = vld [vmem:[%s2903_s5 + $0x170] sm:$0xff] }
 0x520   :  { %v649_v5 = vrot.slane %v636_v2, %v2677_v53  ;;  %v2246_v16 = vpack.c.bf16 %v678_v28, %v677_v24  ;;  %v2294_v0 = vpack.c.bf16 %v1374_v63, %v1373_v62  ;;  %v1376_v2 = vld [vmem:[%s2903_s5 + $0x178] sm:$0xff] }
 0x522   :  { %v651_v8 = vadd.f32 %v649_v5, %v643_v3  ;;  %v652_v9 = vadd.f32 %v649_v5, %v644_v4  ;;  %v657_v10 = vadd.f32 %v655_v6, %v649_v5  ;;  %v658_v11 = vadd.f32 %v656_v7, %v649_v5  ;;  %v1377_v6 = vld [vmem:[%s2906_s6] ss:$0 sm:$0xff] }
 0x523   :  { %v2298_v3 = vpack.c.bf16 %v1376_v2, %v1375_v1 }
 0x524   :  { %v653_v12 = vmax.f32 %v651_v8, 0.0  ;;  %v654_v23 = vmax.f32 %v652_v9, 0.0  ;;  %v659_v13 = vmax.f32 %v657_v10, 0.0  ;;  %v660_v14 = vmax.f32 %v658_v11, 0.0 }
 0x526   :  { %663 = vst [vmem:[#allocation2 + $0x1] sm:$0xff] %v653_v12  ;;  %664 = vst [vmem:[#allocation2 + $0x9] sm:$0xff] %v654_v23  ;;  %1836 = vmatprep.mubr.f32.mxu0 %v653_v12  ;;  %1941 = vmatprep.mubr.f32.mxu1 %v659_v13 }
 0x527   :  { %668 = vst [vmem:[#allocation2 + $0x19] sm:$0xff] %v659_v13  ;;  %669 = vst [vmem:[#allocation2 + $0x21] sm:$0xff] %v660_v14  ;;  %1837 = vmatmul.mubr.f32.vlgmr.msra.gmra.mrb[2].mxu0 %v654_v23  ;;  %1942 = vmatmul.mubr.f32.vlgmr.msra.gmra.mrb[2].mxu1 %v660_v14 }
 0x528   :  { %2241 = vmatpush3.bf16.msra.mxu0 %v2238_v52  ;;  %2337 = vmatpush3.bf16.msra.mxu1 %v2238_v52  ;;  %v1368_v52 = vld [vmem:[%s2903_s5 + $0x138] sm:$0xff] }
 0x529   :  { %2243 = vmatprep.subr.bf16.mxu0 %v2242_v15  ;;  %2339 = vmatprep.subr.bf16.mxu1 %v2242_v15  ;;  %v2282_v54 = vpack.c.bf16 %v1368_v52, %v1367_v51 }
 0x52c   :  { %2245 = vmatpush3.bf16.msra.mxu0 %v2242_v15  ;;  %2341 = vmatpush3.bf16.msra.mxu1 %v2242_v15 }
 0x52d   :  { %v671_v19 = vld [vmem:[#allocation2] sm:$0xff]  ;;  %2247 = vmatprep.subr.bf16.mxu0 %v2246_v16  ;;  %2343 = vmatprep.subr.bf16.mxu1 %v2246_v16  ;;  %v672_v44 = vld [vmem:[#allocation2 + $0x8] sm:$0xff] }
 0x52e   :  { %v962_v20 = vld [vmem:[#allocation2 + $0x18] sm:$0xff]  ;;  %1871 = vmatprep.mubr.f32.mxu0 %v671_v19  ;;  %v963_v45 = vld [vmem:[#allocation2 + $0x20] sm:$0xff]  ;;  %v859_v4 = vld [vmem:[#allocation2 + $0xa] sm:$0xff] }
 0x52f   :  { %1976 = vmatprep.mubr.f32.mxu1 %v962_v20  ;;  %v858_v48 = vld [vmem:[#allocation2 + $0x2] sm:$0xff]  ;;  %v1116_v49 = vld [vmem:[#allocation2 + $0x1a] sm:$0xff] }
 0x530   :  { %2249 = vmatpush3.bf16.msra.mxu0 %v2246_v16  ;;  %2345 = vmatpush3.bf16.msra.mxu1 %v2246_v16  ;;  %v1117_v5 = vld [vmem:[#allocation2 + $0x22] sm:$0xff] }
 0x531   :  { %2251 = vmatprep.subr.bf16.mxu0 %v2250_v21  ;;  %2347 = vmatprep.subr.bf16.mxu1 %v2250_v21 }
 0x534   :  { %2253 = vmatpush3.bf16.msra.mxu0 %v2250_v21  ;;  %2349 = vmatpush3.bf16.msra.mxu1 %v2250_v21 }
 0x535   :  { %2255 = vmatprep.subr.bf16.mxu0 %v2254_v26  ;;  %2351 = vmatprep.subr.bf16.mxu1 %v2254_v26 }
 0x538   :  { %2257 = vmatpush3.bf16.msra.mxu0 %v2254_v26  ;;  %2353 = vmatpush3.bf16.msra.mxu1 %v2254_v26 }
 0x539   :  { %2259 = vmatprep.subr.bf16.mxu0 %v2258_v31  ;;  %2355 = vmatprep.subr.bf16.mxu1 %v2258_v31 }
 0x53c   :  { %2261 = vmatpush3.bf16.msra.mxu0 %v2258_v31  ;;  %2357 = vmatpush3.bf16.msra.mxu1 %v2258_v31 }
 0x53d   :  { %2263 = vmatprep.subr.bf16.mxu0 %v2262_v34  ;;  %2359 = vmatprep.subr.bf16.mxu1 %v2262_v34 }
 0x540   :  { %2265 = vmatpush3.bf16.msra.mxu0 %v2262_v34  ;;  %2361 = vmatpush3.bf16.msra.mxu1 %v2262_v34 }
 0x541   :  { %2267 = vmatprep.subr.bf16.mxu0 %v2266_v37  ;;  %2363 = vmatprep.subr.bf16.mxu1 %v2266_v37 }
 0x544   :  { %2269 = vmatpush3.bf16.msra.mxu0 %v2266_v37  ;;  %2365 = vmatpush3.bf16.msra.mxu1 %v2266_v37 }
 0x545   :  { %2271 = vmatprep.subr.bf16.mxu0 %v2270_v40  ;;  %2367 = vmatprep.subr.bf16.mxu1 %v2270_v40 }
 0x547   :  { %1872 = vmatmul.mubr.f32.vlgmr.msra.gmra.mrb[2].mxu0 %v672_v44  ;;  %1977 = vmatmul.mubr.f32.vlgmr.msra.gmra.mrb[2].mxu1 %v963_v45 }
 0x548   :  { %2273 = vmatpush3.bf16.msra.mxu0 %v2270_v40  ;;  %1906 = vmatprep.mubr.f32.mxu0 %v858_v48 }
 0x549   :  { %2369 = vmatpush3.bf16.msra.mxu1 %v2270_v40  ;;  %2011 = vmatprep.mubr.f32.mxu1 %v1116_v49 }
 0x54a   :  { %2275 = vmatprep.subr.bf16.mxu0 %v2274_v46  ;;  %2371 = vmatprep.subr.bf16.mxu1 %v2274_v46 }
 0x54c   :  { %2277 = vmatpush3.bf16.msra.mxu0 %v2274_v46 }
 0x54d   :  { %2373 = vmatpush3.bf16.msra.mxu1 %v2274_v46  ;;  %2279 = vmatprep.subr.bf16.mxu0 %v2278_v50 }
 0x54e   :  { %2375 = vmatprep.subr.bf16.mxu1 %v2278_v50 }
 0x550   :  { %2281 = vmatpush3.bf16.msra.mxu0 %v2278_v50 }
 0x551   :  { %2377 = vmatpush3.bf16.msra.mxu1 %v2278_v50  ;;  %2283 = vmatprep.subr.bf16.mxu0 %v2282_v54 }
 0x552   :  { %2379 = vmatprep.subr.bf16.mxu1 %v2282_v54 }
 0x554   :  { %2285 = vmatpush3.bf16.msra.mxu0 %v2282_v54 }
 0x555   :  { %2381 = vmatpush3.bf16.msra.mxu1 %v2282_v54  ;;  %2287 = vmatprep.subr.bf16.mxu0 %v2286_v58 }
 0x556   :  { %2383 = vmatprep.subr.bf16.mxu1 %v2286_v58 }
 0x558   :  { %2289 = vmatpush3.bf16.msra.mxu0 %v2286_v58 }
 0x559   :  { %2385 = vmatpush3.bf16.msra.mxu1 %v2286_v58  ;;  %2291 = vmatprep.subr.bf16.mxu0 %v2290_v61 }
 0x55a   :  { %2387 = vmatprep.subr.bf16.mxu1 %v2290_v61 }
 0x55c   :  { %2293 = vmatpush3.bf16.msra.mxu0 %v2290_v61 }
 0x55d   :  { %2389 = vmatpush3.bf16.msra.mxu1 %v2290_v61  ;;  %2295 = vmatprep.subr.bf16.mxu0 %v2294_v0 }
 0x55e   :  { %2391 = vmatprep.subr.bf16.mxu1 %v2294_v0 }
 0x560   :  { %2297 = vmatpush3.bf16.msra.mxu0 %v2294_v0 }
 0x561   :  { %2393 = vmatpush3.bf16.msra.mxu1 %v2294_v0  ;;  %2299 = vmatprep.subr.bf16.mxu0 %v2298_v3 }
 0x562   :  { %2395 = vmatprep.subr.bf16.mxu1 %v2298_v3 }
 0x564   :  { %2301 = vmatpush3.bf16.msra.mxu0 %v2298_v3 }
 0x565   :  { %2397 = vmatpush3.bf16.msra.mxu1 %v2298_v3 }
 0x567   :  { %1907 = vmatmul.mubr.f32.vlgmr.msra.gmra.mrb[2].mxu0 %v859_v4 }
 0x568   :  { %2012 = vmatmul.mubr.f32.vlgmr.msra.gmra.mrb[2].mxu1 %v1117_v5 }
 0x63a   :  { %v1908_v7 = vpop.f32.mrb[2].mxu0 }
 0x63b   :  { %v2851_v8 = vadd.f32 %v1908_v7, %v1377_v6  ;;  %v2013_v9 = vpop.f32.mrb[2].mxu1  ;;  %v943_v10 = vpop.f32.mrb[3].mxu0 }
 0x63c   :  { %v2853_v11 = vadd.f32 %v2013_v9, %v1377_v6  ;;  %v2855_v55 = vadd.f32 %v1377_v6, %v943_v10  ;;  %v1184_v27 = vpop.f32.mrb[3].mxu1 }
 0x63d   :  { %v2857_v12 = vadd.f32 %v1377_v6, %v1184_v27  ;;  %v1197_v27 = vld [vmem:[%s2907_s7] sm:$0x1] }
 0x63e   :  { %v1199_v23 = vadd.f32 %v2851_v8, %v2855_v55 }
 0x63f   :  { %v1207_v13 = vadd.f32 %v2853_v11, %v2857_v12 }
 0x640   :  { %v1200_v14 = vrot.slane %v1199_v23, 4 }
 0x641   :  { %v1208_v15 = vrot.slane %v1207_v13, 4 }
 0x642   :  { %v1201_v24 = vadd.f32 %v1200_v14, %v1199_v23  ;;  %v1198_v14 = vld [vmem:[%s2908_s8] sm:$0x1] }
 0x643   :  { %v1209_v28 = vadd.f32 %v1208_v15, %v1207_v13 }
 0x644   :  { %v1202_v16 = vrot.slane %v1201_v24, 2 }
 0x645   :  { %v1210_v17 = vrot.slane %v1209_v28, 2 }
 0x646   :  { %v1203_v18 = vadd.f32 %v1202_v16, %v1201_v24 }
 0x647   :  { %v1211_v19 = vadd.f32 %v1210_v17, %v1209_v28 }
 0x648   :  { %v1204_v20 = vrot.slane %v1203_v18, 1 }
 0x649   :  { %v1212_v21 = vrot.slane %v1211_v19, 1 }
 0x64a   :  { %v1205_v22 = vadd.f32 %v1204_v20, %v1203_v18 }
 0x64b   :  { %v1213_v25 = vadd.f32 %v1212_v21, %v1211_v19 }
 0x64d   :  { %v1214_v26 = vadd.f32 %v1213_v25, %v1205_v22 }
 0x64f   :  { %1215 = vrot.lane.b32.xlu0 %v1214_v26, %s2423_s0 }
 0x6c1   :  { %v1216_v29 = vpop.permute.xlu0 %1215 }
 0x6c2   :  { %v1217_v30 = vadd.f32 %v1216_v29, %v1214_v26 }
 0x6c4   :  { %1218 = vrot.lane.b32.xlu1 %v1217_v30, %s2424_s2 }
 0x736   :  { %v1219_v31 = vpop.permute.xlu1 %1218 }
 0x737   :  { %v1220_v32 = vadd.f32 %v1219_v31, %v1217_v30 }
 0x739   :  { %1221 = vrot.lane.b32.xlu0 %v1220_v32, %s2425_s25 }
 0x7ab   :  { %v1222_v33 = vpop.permute.xlu0 %1221 }
 0x7ac   :  { %v1223_v34 = vadd.f32 %v1222_v33, %v1220_v32 }
 0x7ae   :  { %1224 = vrot.lane.b32.xlu1 %v1223_v34, %s2426_s26 }
 0x820   :  { %v1225_v35 = vpop.permute.xlu1 %1224 }
 0x821   :  { %v1226_v36 = vadd.f32 %v1225_v35, %v1223_v34 }
 0x823   :  { %v1227_v37 = vmul.f32 0.001953125, %v1226_v36 }
 0x825   :  { %v1231_v38 = vrot.slane %v1227_v37, %v2677_v53 }
 0x827   :  { %v1232_v39 = vsub.f32 %v2855_v55, %v1231_v38  ;;  %v1233_v40 = vsub.f32 %v2851_v8, %v1231_v38  ;;  %v1244_v41 = vsub.f32 %v2857_v12, %v1231_v38  ;;  %v1245_v42 = vsub.f32 %v2853_v11, %v1231_v38 }
 0x829   :  { %v1234_v43 = vmul.f32 %v1232_v39, %v1232_v39  ;;  %v1235_v44 = vmul.f32 %v1233_v40, %v1233_v40  ;;  %v1246_v45 = vmul.f32 %v1244_v41, %v1244_v41  ;;  %v1247_v46 = vmul.f32 %v1245_v42, %v1245_v42 }
 0x82b   :  { %v1236_v47 = vadd.f32 %v1235_v44, %v1234_v43  ;;  %v1248_v48 = vadd.f32 %v1247_v46, %v1246_v45 }
 0x82d   :  { %v1237_v49 = vrot.slane %v1236_v47, 4  ;;  %v1249_v50 = vrot.slane %v1248_v48, 4 }
 0x82f   :  { %v1238_v51 = vadd.f32 %v1237_v49, %v1236_v47  ;;  %v1250_v52 = vadd.f32 %v1249_v50, %v1248_v48 }
 0x831   :  { %v1239_v54 = vrot.slane %v1238_v51, 2  ;;  %v1251_v56 = vrot.slane %v1250_v52, 2 }
 0x833   :  { %v1240_v57 = vadd.f32 %v1239_v54, %v1238_v51  ;;  %v1252_v58 = vadd.f32 %v1251_v56, %v1250_v52 }
 0x835   :  { %v1241_v59 = vrot.slane %v1240_v57, 1  ;;  %v1253_v60 = vrot.slane %v1252_v58, 1 }
 0x837   :  { %v1242_v61 = vadd.f32 %v1241_v59, %v1240_v57  ;;  %v1254_v62 = vadd.f32 %v1253_v60, %v1252_v58 }
 0x839   :  { %v1255_v63 = vadd.f32 %v1254_v62, %v1242_v61 }
 0x83b   :  { %1256 = vrot.lane.b32.xlu0 %v1255_v63, %s2423_s0 }
 0x8ad   :  { %v1257_v0 = vpop.permute.xlu0 %1256 }
 0x8ae   :  { %v1258_v1 = vadd.f32 %v1257_v0, %v1255_v63 }
 0x8b0   :  { %1259 = vrot.lane.b32.xlu1 %v1258_v1, %s2424_s2 }
 0x922   :  { %v1260_v2 = vpop.permute.xlu1 %1259 }
 0x923   :  { %v1261_v3 = vadd.f32 %v1260_v2, %v1258_v1 }
 0x925   :  { %1262 = vrot.lane.b32.xlu0 %v1261_v3, %s2425_s25 }
 0x997   :  { %v1263_v4 = vpop.permute.xlu0 %1262 }
 0x998   :  { %v1264_v5 = vadd.f32 %v1263_v4, %v1261_v3 }
 0x99a   :  { %1265 = vrot.lane.b32.xlu1 %v1264_v5, %s2426_s26 }
 0xa0c   :  { %v1266_v6 = vpop.permute.xlu1 %1265 }
 0xa0d   :  { %v1267_v7 = vadd.f32 %v1266_v6, %v1264_v5 }
 0xa0f   :  { %v1268_v9 = vmul.f32 0.001953125, %v1267_v7 }
 0xa11   :  { %v1269_v10 = vadd.f32 1e-05, %v1268_v9 }
 0xa13   :  { %2421 = vrsqrt.f32 %v1269_v10 }
 0xa1d   :  { %v2422_v23 = vpop.eup %2421 }
 0xa1e   :  { %v1271_v13 = vmul.f32 %v2422_v23, %v1197_v27 }
 0xa20   :  { %v1272_v15 = vmul.f32 %v1271_v13, %v1227_v37  ;;  %v1278_v24 = vrot.slane %v1271_v13, %v2677_v53 }
 0xa22   :  { %v1273_v28 = vsub.f32 %v1198_v14, %v1272_v15  ;;  %v1280_v16 = vmul.f32 %v1278_v24, %v2855_v55  ;;  %v1281_v17 = vmul.f32 %v1278_v24, %v2851_v8  ;;  %v1292_v19 = vmul.f32 %v1278_v24, %v2857_v12 }
 0xa23   :  { %v1293_v20 = vmul.f32 %v1278_v24, %v2853_v11 }
 0xa24   :  { %v1286_v18 = vrot.slane %v1273_v28, %v2677_v53 }
 0xa26   :  { %v1288_v21 = vadd.f32 %v1286_v18, %v1280_v16  ;;  %v1289_v22 = vadd.f32 %v1286_v18, %v1281_v17  ;;  %v1294_v25 = vadd.f32 %v1292_v19, %v1286_v18  ;;  %v1295_v26 = vadd.f32 %v1293_v20, %v1286_v18 }
 0xa28   :  { %v1290_v29 = vmax.f32 %v1288_v21, 0.0  ;;  %v1291_v30 = vmax.f32 %v1289_v22, 0.0  ;;  %v1296_v31 = vmax.f32 %v1294_v25, 0.0  ;;  %v1297_v32 = vmax.f32 %v1295_v26, 0.0 }
 0xa2a   :  { %1298 = vst [vmem:[%s2909_s9] sm:$0xff] %v1290_v29  ;;  %1299 = vst [vmem:[%s2909_s9 + $0x8] sm:$0xff] %v1291_v30 }
 0xa2b   :  { %1300 = vst [vmem:[%s2909_s9 + $0x10] sm:$0xff] %v1296_v31  ;;  %1301 = vst [vmem:[%s2909_s9 + $0x18] sm:$0xff] %v1297_v32 }

</bundles_post_ra>
